<compile_context>
chip_gen: v5e
topology: v5e:2x2
jax: 0.10.0
libtpu: 0.0.40
codegen_flags: <defaults>
</compile_context>

<pallas_src>
import functools

import jax
import jax.numpy as jnp
from jax.experimental import pallas as pl
from jax.experimental.pallas import tpu as pltpu


def _pairwise_dot_kernel(ex_ref, eyt_ref, scalar_ref, out_ref, acc_ref):
    # ex_ref:  [tile_m, tile_k]
    # eyt_ref: [tile_k, tile_n]   (lane-dense along tile_n)
    # scalar_ref: [1, 1] in SMEM
    # acc_ref: [tile_m, tile_n] f32 VMEM accumulator (persists across the K axis)
    @pl.when(pl.program_id(2) == 0)
    def _init():
        acc_ref[...] = jnp.zeros_like(acc_ref)

    acc_ref[...] += jax.lax.dot_general(
        ex_ref[...],
        eyt_ref[...],
        dimension_numbers=(((1,), (0,)), ((), ())),
        preferred_element_type=jnp.float32,
    )

    @pl.when(pl.program_id(2) == pl.num_programs(2) - 1)
    def _store():
        # Fuse the scalar baseline add into the single store per output tile.
        out_ref[...] = (acc_ref[...] + scalar_ref[0, 0]).astype(out_ref.dtype)


def _round_up(x: int, m: int) -> int:
    return -(-x // m) * m


def _vmem_capacity_bytes() -> int:
    # Generation-aware VMEM ceiling (v5e/v6e: 128 MiB, v7x: 64 MiB per core).
    try:
        return int(pltpu.get_tpu_info().vmem_capacity_bytes)
    except Exception:
        return 64 * 1024 * 1024  # conservative fallback (v7x per-core)


@functools.partial(jax.jit, static_argnames=("tm", "tn", "tk", "compute_dtype"))
def bilinear_baseline(z_x, z_y, w_enc, b_enc, param, w_proj, b_proj,
                      *, tm: int = 512, tn: int = 512, tk: int = 2048,
                      compute_dtype=jnp.bfloat16):
    """z_x: [N, Din], z_y: [M, Din] -> [N, M] float32.

    tm (multiple of 8) / tn (multiple of 128) are preferred output-tile sizes;
    tk (multiple of 128) is the max contraction tile before a K grid axis with
    an f32 accumulator kicks in.  compute_dtype controls the MXU input
    precision for the pairwise dot (bf16 default, f32 accumulation always).
    """
    assert tm % 8 == 0 and tn % 128 == 0 and tk % 128 == 0

    # ---- Hoisted, non-tiled work (plain XLA, computed exactly once) ----------
    ex = (z_x @ w_enc + b_enc).astype(compute_dtype)          # [N, K]
    ey = (z_y @ w_enc + b_enc).astype(compute_dtype)          # [M, K]
    ey_t = ey.T                                                # [K, M] lane-dense along M
    scalar = (jnp.sum(param * w_proj) + b_proj[0, 0]).reshape(1, 1)
    scalar = scalar.astype(jnp.float32)

    n, k = ex.shape
    m = ey_t.shape[1]

    # ---- Small-problem fast path: grid/pipeline overhead would dominate ------
    if n < 8 or m < 128 or n * m <= 128 * 128:
        dot = jax.lax.dot_general(ex, ey, (((1,), (1,)), ((), ())),
                                  preferred_element_type=jnp.float32)
        return dot + scalar[0, 0]

    # ---- Contraction-dim padding (zeros are inert in the dot) ----------------
    k_pad = _round_up(k, 128)
    if k_pad <= tk:
        tile_k = k_pad
    else:
        tile_k = tk
        k_pad = _round_up(k_pad, tk)   # keep K divisible by tile_k (no edge garbage in contraction)
    if k_pad != k:
        ex = jnp.pad(ex, ((0, 0), (0, k_pad - k)))
        ey_t = jnp.pad(ey_t, ((0, k_pad - k), (0, 0)))

    # ---- Output tiling (no N/M padding; Pallas masks edge blocks) -------------
    tile_m = min(tm, _round_up(n, 8))
    tile_n = min(tn, _round_up(m, 128))
    grid = (pl.cdiv(n, tile_m), pl.cdiv(m, tile_n), k_pad // tile_k)

    in_itemsize = jnp.dtype(compute_dtype).itemsize
    # Double-buffered inputs + double-buffered f32 output + f32 accumulator + slack.
    vmem_need = (2 * (tile_m * tile_k + tile_k * tile_n) * in_itemsize
                 + 3 * tile_m * tile_n * 4 + (2 << 20))
    vmem_limit = int(min(max(vmem_need, 32 << 20),
                         int(_vmem_capacity_bytes() * 0.9)))

    gi, gj, gk = grid
    bytes_in = gi * gj * gk * (tile_m * tile_k + tile_k * tile_n) * in_itemsize
    bytes_out = n * m * 4
    cost = pl.CostEstimate(flops=2 * n * m * k_pad, transcendentals=0,
                           bytes_accessed=bytes_in + bytes_out)

    out = pl.pallas_call(
        _pairwise_dot_kernel,
        out_shape=jax.ShapeDtypeStruct((n, m), jnp.float32),
        grid=grid,
        in_specs=[
            pl.BlockSpec((tile_m, tile_k), lambda i, j, kk: (i, kk)),
            pl.BlockSpec((tile_k, tile_n), lambda i, j, kk: (kk, j)),
            # Scalar baseline: whole (1,1) array resident in SMEM.
            pl.BlockSpec(memory_space=pltpu.MemorySpace.SMEM),
        ],
        out_specs=pl.BlockSpec((tile_m, tile_n), lambda i, j, kk: (i, j)),
        scratch_shapes=[pltpu.VMEM((tile_m, tile_n), jnp.float32)],
        compiler_params=pltpu.CompilerParams(
            dimension_semantics=("parallel", "parallel", "arbitrary"),
            vmem_limit_bytes=vmem_limit,
        ),
        cost_estimate=cost,
    )(ex, ey_t, scalar)
    return out


if __name__ == "__main__":
    key = jax.random.PRNGKey(0)
    k_zx, k_zy, k_we, k_be, k_p, k_wp = jax.random.split(key, 6)

    # Small shapes consistent with the module's forward.
    N, M = 512, 1024      # number of samples in z_x / z_y
    D_IN = 32             # embedding dim fed to the encoder
    D_ENC = 16            # encoder output dim
    PARAM_DIM = 64        # ParametricBaseline param_dim
    BIAS_INIT = 0.0

    z_x = jax.random.normal(k_zx, (N, D_IN), dtype=jnp.float32)
    z_y = jax.random.normal(k_zy, (M, D_IN), dtype=jnp.float32)

    # Encoder = Linear(D_IN, D_ENC), weight stored transposed [D_IN, D_ENC]
    # (PyTorch-style uniform +-1/sqrt(fan_in) init).
    bound = 1.0 / (D_IN ** 0.5)
    w_enc = jax.random.uniform(k_we, (D_IN, D_ENC), jnp.float32, -bound, bound)
    b_enc = jax.random.uniform(k_be, (1, D_ENC), jnp.float32, -bound, bound)

    # ParametricBaseline: param ~ randn(1, PARAM_DIM); projection init_selu
    # (lecun-normal, std = 1/sqrt(fan_in)); bias = bias_init.
    param = jax.random.normal(k_p, (1, PARAM_DIM), dtype=jnp.float32)
    w_proj = (jax.random.normal(k_wp, (1, PARAM_DIM), dtype=jnp.float32)
              / jnp.sqrt(jnp.float32(PARAM_DIM)))
    b_proj = jnp.full((1, 1), BIAS_INIT, dtype=jnp.float32)

    # Pure-JAX (f32) reference.
    ex_ref = z_x @ w_enc + b_enc
    ey_ref = z_y @ w_enc + b_enc
    scalar_ref = jnp.sum(param * w_proj) + b_proj[0, 0]
    ref = ex_ref @ ey_ref.T + scalar_ref

    # 1) f32 compute path (tight check).
    out_f32 = jax.block_until_ready(
        bilinear_baseline(z_x, z_y, w_enc, b_enc, param, w_proj, b_proj,
                          compute_dtype=jnp.float32))
    assert out_f32.shape == (N, M)
    assert jnp.allclose(out_f32, ref, atol=1e-4, rtol=1e-4), "f32 mismatch vs reference"

    # 2) Default bf16 compute path (loose check vs f32 reference; bf16 cast error).
    out_bf16 = jax.block_until_ready(
        bilinear_baseline(z_x, z_y, w_enc, b_enc, param, w_proj, b_proj))
    assert out_bf16.shape == (N, M)
    assert jnp.allclose(out_bf16, ref, atol=2e-1, rtol=5e-2), "bf16 mismatch vs reference"

    # 3) Larger encoder dim exercising the K ("arbitrary") accumulator axis.
    D_ENC_BIG = 384
    w_enc2 = jax.random.uniform(k_we, (D_IN, D_ENC_BIG), jnp.float32, -bound, bound)
    b_enc2 = jax.random.uniform(k_be, (1, D_ENC_BIG), jnp.float32, -bound, bound)
    N2, M2 = 128, 256
    out_ks = jax.block_until_ready(
        bilinear_baseline(z_x[:N2], z_y[:M2], w_enc2, b_enc2, param, w_proj, b_proj,
                          tk=128, compute_dtype=jnp.float32))
    ref2 = ((z_x[:N2] @ w_enc2 + b_enc2) @ (z_y[:M2] @ w_enc2 + b_enc2).T
            + scalar_ref)
    assert out_ks.shape == (N2, M2)
    assert jnp.allclose(out_ks, ref2, atol=1e-3, rtol=1e-3), "K-split mismatch vs reference"

    print("KERNEL_OK")
</pallas_src>

<mosaic_0001>
module attributes {stable_mosaic.version = 11 : i64} {
  func.func @_pairwise_dot_kernel(%arg0: i32, %arg1: i32, %arg2: i32, %arg3: memref<512x128xf32, #tpu.memory_space<vmem>>, %arg4: memref<128x512xf32, #tpu.memory_space<vmem>>, %arg5: memref<1x1xf32, #tpu.memory_space<smem>>, %arg6: memref<512x512xf32, #tpu.memory_space<vmem>>, %arg7: memref<512x512xf32, #tpu.memory_space<vmem>>) attributes {dimension_semantics = [#tpu.dimension_semantics<parallel>, #tpu.dimension_semantics<parallel>, #tpu.dimension_semantics<arbitrary>], iteration_bounds = array<i64: 1, 2, 1>, scalar_prefetch = 0 : i64, scratch_operands = 1 : i64, tpu.core_type = #tpu.core_type<tc>, window_params = [{transform_indices = @transform_0, window_bounds = array<i64: 512, 128>}, {transform_indices = @transform_1, window_bounds = array<i64: 128, 512>}, {transform_indices = @transform_2, window_bounds = array<i64: 1, 1>}, {transform_indices = @transform_3, window_bounds = array<i64: 512, 512>}]} {
    %c0_i32 = arith.constant 0 : i32
    %0 = arith.cmpi eq, %arg2, %c0_i32 : i32
    %1 = arith.extui %0 : i1 to i32
    %c0_i32_0 = arith.constant 0 : i32
    %2 = arith.cmpi ne, %1, %c0_i32_0 : i32
    scf.if %2 {
      %cst_10 = arith.constant 0.000000e+00 : f32
      %12 = vector.broadcast %cst_10 : f32 to vector<512x512xf32>
      %c0_11 = arith.constant 0 : index
      %c0_12 = arith.constant 0 : index
      %13 = vector.load %arg7[%c0_11, %c0_12] : memref<512x512xf32, #tpu.memory_space<vmem>>, vector<512x512xf32>
      tpu.vector_store %arg7[%c0_11, %c0_12], %12 {strides = array<i32>} : memref<512x512xf32, #tpu.memory_space<vmem>>, vector<512x512xf32>,
    } else {
    }
    %c0 = arith.constant 0 : index
    %c0_1 = arith.constant 0 : index
    %3 = vector.load %arg7[%c0, %c0_1] : memref<512x512xf32, #tpu.memory_space<vmem>>, vector<512x512xf32>
    %c0_2 = arith.constant 0 : index
    %c0_3 = arith.constant 0 : index
    %4 = vector.load %arg3[%c0_2, %c0_3] : memref<512x128xf32, #tpu.memory_space<vmem>>, vector<512x128xf32>
    %c0_4 = arith.constant 0 : index
    %c0_5 = arith.constant 0 : index
    %5 = vector.load %arg4[%c0_4, %c0_5] : memref<128x512xf32, #tpu.memory_space<vmem>>, vector<128x512xf32>
    %cst = arith.constant dense<0.000000e+00> : vector<512x512xf32>
    %6 = tpu.matmul %4, %5, %cst {dimension_numbers = #tpu.dot_dimension_numbers<[1], [0], [0], [1], [0, 0, 1, 1], [], []>} : vector<512x128xf32>, vector<128x512xf32>, vector<512x512xf32> -> vector<512x512xf32>
    %7 = arith.addf %3, %6 : vector<512x512xf32>
    %c0_6 = arith.constant 0 : index
    %c0_7 = arith.constant 0 : index
    %8 = vector.load %arg7[%c0_6, %c0_7] : memref<512x512xf32, #tpu.memory_space<vmem>>, vector<512x512xf32>
    tpu.vector_store %arg7[%c0_6, %c0_7], %7 {strides = array<i32>} : memref<512x512xf32, #tpu.memory_space<vmem>>, vector<512x512xf32>,
    %c0_i32_8 = arith.constant 0 : i32
    %9 = arith.cmpi eq, %arg2, %c0_i32_8 : i32
    %10 = arith.extui %9 : i1 to i32
    %c0_i32_9 = arith.constant 0 : i32
    %11 = arith.cmpi ne, %10, %c0_i32_9 : i32
    scf.if %11 {
      %c0_10 = arith.constant 0 : index
      %c0_11 = arith.constant 0 : index
      %12 = vector.load %arg7[%c0_10, %c0_11] : memref<512x512xf32, #tpu.memory_space<vmem>>, vector<512x512xf32>
      %c0_12 = arith.constant 0 : index
      %c0_13 = arith.constant 0 : index
      %13 = memref.load %arg5[%c0_12, %c0_13] : memref<1x1xf32, #tpu.memory_space<smem>>
      %14 = vector.broadcast %13 : f32 to vector<512x512xf32>
      %15 = arith.addf %12, %14 : vector<512x512xf32>
      %c0_14 = arith.constant 0 : index
      %c0_15 = arith.constant 0 : index
      %16 = vector.load %arg6[%c0_14, %c0_15] : memref<512x512xf32, #tpu.memory_space<vmem>>, vector<512x512xf32>
      tpu.vector_store %arg6[%c0_14, %c0_15], %15 {strides = array<i32>} : memref<512x512xf32, #tpu.memory_space<vmem>>, vector<512x512xf32>,
    } else {
    }
    return
  }
  func.func @transform_0(%arg0: i32, %arg1: i32, %arg2: i32) -> (i32, i32) {
    %c0_i32 = arith.constant 0 : i32
    return %arg0, %arg2 : i32, i32
  }
  func.func @transform_1(%arg0: i32, %arg1: i32, %arg2: i32) -> (i32, i32) {
    %c0_i32 = arith.constant 0 : i32
    return %arg2, %arg1 : i32, i32
  }
  func.func @transform_2(%arg0: i32, %arg1: i32, %arg2: i32) -> (i32, i32) {
    %c0_i32 = arith.constant 0 : i32
    %c0_i32_0 = arith.constant 0 : i32
    %c0_i32_1 = arith.constant 0 : i32
    return %c0_i32, %c0_i32_0 : i32, i32
  }
  func.func @transform_3(%arg0: i32, %arg1: i32, %arg2: i32) -> (i32, i32) {
    %c0_i32 = arith.constant 0 : i32
    return %arg0, %arg1 : i32, i32
  }
}

</mosaic_0001>

<bundles_post_ra>
// kernel: bilinear_baseline.1
= control target key start
LH: loop header
LB: loop body
LE: loop exit
PB: predicated region body
PF: predicated region fallthrough
CT: control target
= control target key end

     0   :  { %s4462_s0 = inlined_call_operand.vmem [shape: f32[512,128], index: 0, kind: input, shape index: {}]   ;;  %s4463_s1 = inlined_call_operand.vmem [shape: f32[128,1024], index: 1, kind: input, shape index: {}]   ;;  %s4464_s2 = inlined_call_operand.<no memory space> [shape: f32[1,1], index: 2, kind: input, shape index: {}]   ;;  %s4465_s3 = inlined_call_operand.hbm [shape: f32[512,1024], index: 3, kind: output, shape index: {}]  }
   0x1   :  { %8 = sst [smem:[#allocation3]] %s4464_s2 }
   0x2   :  { %9 = vsyncpa [#allocation6], 0 }
   0x3   :  { %11 = vsyncpa [#allocation6 + $0x1], 0  ;;  %s3448_s14 = smov 0   ;;  %s3450_s15 = smov 0  }
   0x4   :  { %s3452_s16 = smov 0   ;;  %s3454_s17 = smov 0  }
   0x5   :  { %s3456_s18 = smov 0   ;;  %s3458_s19 = smov 0  }
   0x6 LB: > { %s3266_s2 = sadd.s32 4294967295, %s3420_s19   ;;  %s3267_s20 = sadd.s32 4294967294, %s3420_s19   ;;  %s3420_s19 = sphi %s3458_s19, %s17_s19   ;;  %s3416_s18 = sphi %s3456_s18, %s4472_s18   ;;  %s3412_s17 = sphi %s3454_s17, %s4471_s17   ;;  %s3408_s16 = sphi %s3452_s16, %s4470_s16   ;;  %s3404_s15 = sphi %s3450_s15, %s4469_s15   ;;  %s3400_s14 = sphi %s3448_s14, %s4468_s14  }
   0x7   : > { %s32_s21 = sadd.s32 1, %s3416_s18  ;;  %s73_s22 = sadd.s32 1, %s3408_s16 }
   0x8   : > { %p34_p0 = scmp.ge.s32.totalorder %s32_s21, 2  ;;  %p80_p1 = scmp.ne.s32.totalorder %s3408_s16, %s3404_s15 }
   0x9   : > { %p81_p2 = scmp.eq.s32.totalorder %s3420_s19, 0  ;;  %p133_p3 = scmp.eq.s32.totalorder %s3266_s2, 1 }
   0xa   : > { %s4474_s21 = smov (%p34_p0, %s32_s21), 0  ;;  %p138_p6 = scmp.ne.s32.totalorder %s3404_s15, %s3400_s14 }
   0xb   : > { %p82_p4 = por %p81_p2, %p80_p1  ;;  %p3487_p5 = por %p133_p3, %p80_p1 }
   0xc   : > { %s69_s24 = ssub.s32 %s3416_s18, %s4474_s21  ;;  %p139_p8 = scmp.eq.s32.totalorder %s3267_s20, 1 }
   0xd   : > { %p71_p7 = scmp.eq.s32.totalorder %s69_s24, 0  ;;  %p3270_p10 = scmp.ge.s32.totalorder %s3420_s19, 2 }
   0xe   : > { %p3498_p9 = por %p139_p8, %p138_p6 }
   0xf   : > { %s3496_s25 = scalar_select %p71_p7, %s3408_s16, %s73_s22  }
  0x10   : > { %170 = sbr.rel (%p3270_p10) target bundleno = 89 (0x59), region = 24 }
  0x15   : > { %173 = sbr.rel (!%p82_p4) target bundleno = 89 (0x59), region = 28  ;;  %s175_s27 = sand.u32 (%p82_p4), 1, %s3408_s16  }
  0x16   : > { %s3282_s28 = sshll.u32 (%p82_p4), %s3416_s18, 5  ;;  %s3271_s29 = sshll.u32 (%p82_p4), %s175_s27, 9 }
  0x17   : > { %s3510_s5 = scalar_lea.vmem (%p82_p4), %s4463_s1, %s3282_s28  ;;  %s3515_s6 = scalar_lea.vmem (%p82_p4), [#allocation4], %s3271_s29 }
  0x18   : > { %v196_v0 = vld [vmem:[%s3510_s5] sm:$0xff] (%p82_p4)  ;;  %v198_v1 = vld [vmem:[%s3510_s5 + $0x8] sm:$0xff] (%p82_p4)  ;;  %v200_v2 = vld [vmem:[%s3510_s5 + $0x10] sm:$0xff] (%p82_p4) }
  0x19   : > { %197 = vst [vmem:[%s3515_s6] sm:$0xff] (%p82_p4), %v196_v0  ;;  %v202_v3 = vld [vmem:[%s3510_s5 + $0x18] sm:$0xff] (%p82_p4)  ;;  %v204_v4 = vld [vmem:[%s3510_s5 + $0x40] sm:$0xff] (%p82_p4)  ;;  %v206_v5 = vld [vmem:[%s3510_s5 + $0x48] sm:$0xff] (%p82_p4) }
  0x1a   : > { %199 = vst [vmem:[%s3515_s6 + $0x8] sm:$0xff] %v198_v1  ;;  %v208_v6 = vld [vmem:[%s3510_s5 + $0x50] sm:$0xff]  ;;  %v210_v7 = vld [vmem:[%s3510_s5 + $0x58] sm:$0xff]  ;;  %v212_v8 = vld [vmem:[%s3510_s5 + $0x80] sm:$0xff] }
  0x1b   : > { %201 = vst [vmem:[%s3515_s6 + $0x10] sm:$0xff] %v200_v2  ;;  %v214_v9 = vld [vmem:[%s3510_s5 + $0x88] sm:$0xff]  ;;  %v216_v10 = vld [vmem:[%s3510_s5 + $0x90] sm:$0xff]  ;;  %v218_v11 = vld [vmem:[%s3510_s5 + $0x98] sm:$0xff] }
  0x1c   : > { %203 = vst [vmem:[%s3515_s6 + $0x18] sm:$0xff] %v202_v3  ;;  %v220_v12 = vld [vmem:[%s3510_s5 + $0xc0] sm:$0xff]  ;;  %v222_v13 = vld [vmem:[%s3510_s5 + $0xc8] sm:$0xff]  ;;  %v224_v14 = vld [vmem:[%s3510_s5 + $0xd0] sm:$0xff] }
  0x1d   : > { %205 = vst [vmem:[%s3515_s6 + $0x20] sm:$0xff] %v204_v4  ;;  %v226_v15 = vld [vmem:[%s3510_s5 + $0xd8] sm:$0xff]  ;;  %v228_v16 = vld [vmem:[%s3510_s5 + $0x100] sm:$0xff]  ;;  %v230_v17 = vld [vmem:[%s3510_s5 + $0x108] sm:$0xff] }
  0x1e   : > { %207 = vst [vmem:[%s3515_s6 + $0x28] sm:$0xff] %v206_v5  ;;  %v232_v18 = vld [vmem:[%s3510_s5 + $0x110] sm:$0xff]  ;;  %v234_v19 = vld [vmem:[%s3510_s5 + $0x118] sm:$0xff]  ;;  %v236_v20 = vld [vmem:[%s3510_s5 + $0x140] sm:$0xff] }
  0x1f   : > { %209 = vst [vmem:[%s3515_s6 + $0x30] sm:$0xff] %v208_v6  ;;  %v238_v21 = vld [vmem:[%s3510_s5 + $0x148] sm:$0xff]  ;;  %v240_v22 = vld [vmem:[%s3510_s5 + $0x150] sm:$0xff]  ;;  %v242_v23 = vld [vmem:[%s3510_s5 + $0x158] sm:$0xff] }
  0x20   : > { %211 = vst [vmem:[%s3515_s6 + $0x38] sm:$0xff] %v210_v7  ;;  %v244_v24 = vld [vmem:[%s3510_s5 + $0x180] sm:$0xff]  ;;  %v246_v25 = vld [vmem:[%s3510_s5 + $0x188] sm:$0xff]  ;;  %v248_v26 = vld [vmem:[%s3510_s5 + $0x190] sm:$0xff] }
  0x21   : > { %213 = vst [vmem:[%s3515_s6 + $0x40] sm:$0xff] %v212_v8  ;;  %v250_v27 = vld [vmem:[%s3510_s5 + $0x198] sm:$0xff]  ;;  %v252_v28 = vld [vmem:[%s3510_s5 + $0x1c0] sm:$0xff]  ;;  %v254_v29 = vld [vmem:[%s3510_s5 + $0x1c8] sm:$0xff] }
  0x22   : > { %215 = vst [vmem:[%s3515_s6 + $0x48] sm:$0xff] %v214_v9  ;;  %v256_v30 = vld [vmem:[%s3510_s5 + $0x1d0] sm:$0xff]  ;;  %v258_v31 = vld [vmem:[%s3510_s5 + $0x1d8] sm:$0xff]  ;;  %v260_v32 = vld [vmem:[%s3510_s5 + $0x200] sm:$0xff] }
  0x23   : > { %217 = vst [vmem:[%s3515_s6 + $0x50] sm:$0xff] %v216_v10  ;;  %v262_v33 = vld [vmem:[%s3510_s5 + $0x208] sm:$0xff]  ;;  %v264_v34 = vld [vmem:[%s3510_s5 + $0x210] sm:$0xff]  ;;  %v266_v35 = vld [vmem:[%s3510_s5 + $0x218] sm:$0xff] }
  0x24   : > { %219 = vst [vmem:[%s3515_s6 + $0x58] sm:$0xff] %v218_v11  ;;  %v268_v36 = vld [vmem:[%s3510_s5 + $0x240] sm:$0xff]  ;;  %v270_v37 = vld [vmem:[%s3510_s5 + $0x248] sm:$0xff]  ;;  %v272_v38 = vld [vmem:[%s3510_s5 + $0x250] sm:$0xff] }
  0x25   : > { %221 = vst [vmem:[%s3515_s6 + $0x60] sm:$0xff] %v220_v12  ;;  %v274_v39 = vld [vmem:[%s3510_s5 + $0x258] sm:$0xff]  ;;  %v276_v40 = vld [vmem:[%s3510_s5 + $0x280] sm:$0xff]  ;;  %v278_v41 = vld [vmem:[%s3510_s5 + $0x288] sm:$0xff] }
  0x26   : > { %223 = vst [vmem:[%s3515_s6 + $0x68] sm:$0xff] %v222_v13  ;;  %v280_v42 = vld [vmem:[%s3510_s5 + $0x290] sm:$0xff]  ;;  %v282_v43 = vld [vmem:[%s3510_s5 + $0x298] sm:$0xff]  ;;  %v284_v44 = vld [vmem:[%s3510_s5 + $0x2c0] sm:$0xff] }
  0x27   : > { %225 = vst [vmem:[%s3515_s6 + $0x70] sm:$0xff] %v224_v14  ;;  %v286_v45 = vld [vmem:[%s3510_s5 + $0x2c8] sm:$0xff]  ;;  %v288_v46 = vld [vmem:[%s3510_s5 + $0x2d0] sm:$0xff]  ;;  %v290_v47 = vld [vmem:[%s3510_s5 + $0x2d8] sm:$0xff] }
  0x28   : > { %227 = vst [vmem:[%s3515_s6 + $0x78] sm:$0xff] %v226_v15  ;;  %v292_v48 = vld [vmem:[%s3510_s5 + $0x300] sm:$0xff]  ;;  %v294_v49 = vld [vmem:[%s3510_s5 + $0x308] sm:$0xff]  ;;  %v296_v50 = vld [vmem:[%s3510_s5 + $0x310] sm:$0xff] }
  0x29   : > { %229 = vst [vmem:[%s3515_s6 + $0x80] sm:$0xff] %v228_v16  ;;  %v298_v51 = vld [vmem:[%s3510_s5 + $0x318] sm:$0xff]  ;;  %v300_v52 = vld [vmem:[%s3510_s5 + $0x340] sm:$0xff]  ;;  %v302_v53 = vld [vmem:[%s3510_s5 + $0x348] sm:$0xff] }
  0x2a   : > { %231 = vst [vmem:[%s3515_s6 + $0x88] sm:$0xff] %v230_v17  ;;  %v304_v54 = vld [vmem:[%s3510_s5 + $0x350] sm:$0xff]  ;;  %v306_v55 = vld [vmem:[%s3510_s5 + $0x358] sm:$0xff]  ;;  %v308_v56 = vld [vmem:[%s3510_s5 + $0x380] sm:$0xff] }
  0x2b   : > { %233 = vst [vmem:[%s3515_s6 + $0x90] sm:$0xff] %v232_v18  ;;  %v310_v57 = vld [vmem:[%s3510_s5 + $0x388] sm:$0xff]  ;;  %v312_v58 = vld [vmem:[%s3510_s5 + $0x390] sm:$0xff]  ;;  %v314_v59 = vld [vmem:[%s3510_s5 + $0x398] sm:$0xff] }
  0x2c   : > { %235 = vst [vmem:[%s3515_s6 + $0x98] sm:$0xff] %v234_v19  ;;  %v316_v60 = vld [vmem:[%s3510_s5 + $0x3c0] sm:$0xff]  ;;  %v318_v61 = vld [vmem:[%s3510_s5 + $0x3c8] sm:$0xff]  ;;  %v320_v62 = vld [vmem:[%s3510_s5 + $0x3d0] sm:$0xff] }
  0x2d   : > { %237 = vst [vmem:[%s3515_s6 + $0xa0] sm:$0xff] %v236_v20  ;;  %v322_v63 = vld [vmem:[%s3510_s5 + $0x3d8] sm:$0xff] }
  0x2e   : > { %239 = vst [vmem:[%s3515_s6 + $0xa8] sm:$0xff] %v238_v21 }
  0x2f   : > { %241 = vst [vmem:[%s3515_s6 + $0xb0] sm:$0xff] %v240_v22 }
  0x30   : > { %243 = vst [vmem:[%s3515_s6 + $0xb8] sm:$0xff] %v242_v23 }
  0x31   : > { %245 = vst [vmem:[%s3515_s6 + $0xc0] sm:$0xff] %v244_v24 }
  0x32   : > { %247 = vst [vmem:[%s3515_s6 + $0xc8] sm:$0xff] %v246_v25 }
  0x33   : > { %249 = vst [vmem:[%s3515_s6 + $0xd0] sm:$0xff] %v248_v26 }
  0x34   : > { %251 = vst [vmem:[%s3515_s6 + $0xd8] sm:$0xff] %v250_v27 }
  0x35   : > { %253 = vst [vmem:[%s3515_s6 + $0xe0] sm:$0xff] %v252_v28 }
  0x36   : > { %255 = vst [vmem:[%s3515_s6 + $0xe8] sm:$0xff] %v254_v29 }
  0x37   : > { %257 = vst [vmem:[%s3515_s6 + $0xf0] sm:$0xff] %v256_v30 }
  0x38   : > { %259 = vst [vmem:[%s3515_s6 + $0xf8] sm:$0xff] %v258_v31 }
  0x39   : > { %261 = vst [vmem:[%s3515_s6 + $0x100] sm:$0xff] %v260_v32 }
  0x3a   : > { %263 = vst [vmem:[%s3515_s6 + $0x108] sm:$0xff] %v262_v33 }
  0x3b   : > { %265 = vst [vmem:[%s3515_s6 + $0x110] sm:$0xff] %v264_v34 }
  0x3c   : > { %267 = vst [vmem:[%s3515_s6 + $0x118] sm:$0xff] %v266_v35 }
  0x3d   : > { %269 = vst [vmem:[%s3515_s6 + $0x120] sm:$0xff] %v268_v36 }
  0x3e   : > { %271 = vst [vmem:[%s3515_s6 + $0x128] sm:$0xff] %v270_v37 }
  0x3f   : > { %273 = vst [vmem:[%s3515_s6 + $0x130] sm:$0xff] %v272_v38 }
  0x40   : > { %275 = vst [vmem:[%s3515_s6 + $0x138] sm:$0xff] %v274_v39 }
  0x41   : > { %277 = vst [vmem:[%s3515_s6 + $0x140] sm:$0xff] %v276_v40 }
  0x42   : > { %279 = vst [vmem:[%s3515_s6 + $0x148] sm:$0xff] %v278_v41 }
  0x43   : > { %281 = vst [vmem:[%s3515_s6 + $0x150] sm:$0xff] %v280_v42 }
  0x44   : > { %283 = vst [vmem:[%s3515_s6 + $0x158] sm:$0xff] %v282_v43 }
  0x45   : > { %285 = vst [vmem:[%s3515_s6 + $0x160] sm:$0xff] %v284_v44 }
  0x46   : > { %287 = vst [vmem:[%s3515_s6 + $0x168] sm:$0xff] %v286_v45 }
  0x47   : > { %289 = vst [vmem:[%s3515_s6 + $0x170] sm:$0xff] %v288_v46 }
  0x48   : > { %291 = vst [vmem:[%s3515_s6 + $0x178] sm:$0xff] %v290_v47 }
  0x49   : > { %293 = vst [vmem:[%s3515_s6 + $0x180] sm:$0xff] %v292_v48 }
  0x4a   : > { %295 = vst [vmem:[%s3515_s6 + $0x188] sm:$0xff] %v294_v49 }
  0x4b   : > { %297 = vst [vmem:[%s3515_s6 + $0x190] sm:$0xff] %v296_v50 }
  0x4c   : > { %299 = vst [vmem:[%s3515_s6 + $0x198] sm:$0xff] %v298_v51 }
  0x4d   : > { %301 = vst [vmem:[%s3515_s6 + $0x1a0] sm:$0xff] %v300_v52 }
  0x4e   : > { %303 = vst [vmem:[%s3515_s6 + $0x1a8] sm:$0xff] %v302_v53 }
  0x4f   : > { %305 = vst [vmem:[%s3515_s6 + $0x1b0] sm:$0xff] %v304_v54 }
  0x50   : > { %307 = vst [vmem:[%s3515_s6 + $0x1b8] sm:$0xff] %v306_v55 }
  0x51   : > { %309 = vst [vmem:[%s3515_s6 + $0x1c0] sm:$0xff] %v308_v56 }
  0x52   : > { %311 = vst [vmem:[%s3515_s6 + $0x1c8] sm:$0xff] %v310_v57 }
  0x53   : > { %313 = vst [vmem:[%s3515_s6 + $0x1d0] sm:$0xff] %v312_v58 }
  0x54   : > { %315 = vst [vmem:[%s3515_s6 + $0x1d8] sm:$0xff] %v314_v59 }
  0x55   : > { %317 = vst [vmem:[%s3515_s6 + $0x1e0] sm:$0xff] %v316_v60 }
  0x56   : > { %319 = vst [vmem:[%s3515_s6 + $0x1e8] sm:$0xff] %v318_v61 }
  0x57   : > { %321 = vst [vmem:[%s3515_s6 + $0x1f0] sm:$0xff] %v320_v62 }
  0x58   : > { %323 = vst [vmem:[%s3515_s6 + $0x1f8] sm:$0xff] %v322_v63 }
  0x59 PF: > { %p3274_p11 = scmp.ge.s32.totalorder %s3420_s19, 1  ;;  %p328_p12 = scmp.lt.s32.totalorder %s3420_s19, 3 }
  0x5b   : > { %p329_p13 = pnand %p3274_p11, %p328_p12 }
  0x5c   : > { %s3645_s7 = sand.u32 (!%p329_p13), 1, %s3404_s15   ;;  %s3283_s10 = sshll.u32 (!%p329_p13), %s3412_s17, 5 }
  0x5d   : > { %332 = sbr.rel (%p329_p13) target bundleno = 774 (0x306), region = 51  ;;  %s3275_s8 = sshll.u32 (!%p329_p13), %s3645_s7, 9 }
  0x5e   : > { %s3648_s9 = scalar_lea.vmem (!%p329_p13), [#allocation4], %s3275_s8  ;;  %s2630_s8 = sld [smem:[#allocation3]] (!%p329_p13) }
  0x5f   : > { %s3276_s11 = sshll.u32 (!%p329_p13), %s3645_s7, 11  ;;  %s3159_s2 = scalar_lea.hbm (!%p329_p13), %s4465_s3, %s3283_s10 }
  0x60   : > { %s3770_s12 = scalar_lea.vmem (!%p329_p13), [#allocation5], %s3276_s11  ;;  %s3162_s17 = sshll.u32 (!%p329_p13), %s3159_s2, 4  ;;  %s3163_s17 = int_to_ptr.hbm [resolvable:$true] %s3162_s17 }
  0x61   : > { %s3160_s20 = sshll.u32 (!%p329_p13), %s3770_s12, 4  ;;  %s3145_s22 = scalar_lea.sflag (!%p329_p13), [#allocation6], %s3645_s7  ;;  %s3161_s20 = int_to_ptr.vmem [resolvable:$true] %s3160_s20 }
  0x62   : > { %v1021_v0 = vld [vmem:[%s3648_s9 + $0x1f0] sm:$0xff]  ;;  %v1022_v1 = vld [vmem:[%s3648_s9 + $0x1f8] sm:$0xff]  ;;  %v1019_v6 = vld [vmem:[%s3648_s9 + $0x1e0] sm:$0xff]  ;;  %s3356_s24 = sshra.s32 %s3163_s17, 4  ;;  %s3362_s30 = scalar_lea.hbm %s4465_s3, 4096  ;;  %s3357_s24 = int_to_ptr.hbm [resolvable:$true] %s3356_s24 }
  0x63   : > { %v1017_v2 = vld [vmem:[%s3648_s9 + $0x1d0] sm:$0xff]  ;;  %1441 = vmatpush.msra.mxu2 %v1021_v0  ;;  %1650 = vmatpush.msra.mxu3 %v1022_v1  ;;  %v1018_v3 = vld [vmem:[%s3648_s9 + $0x1d8] sm:$0xff]  ;;  %v1020_v7 = vld [vmem:[%s3648_s9 + $0x1e8] sm:$0xff]  ;;  %s3358_s27 = scalar_lea.hbm %s3357_s24, 2048  ;;  %p3363_p3 = scmp.lt.s32.totalorder %s3357_s24, %s4465_s3 }
  0x64   : > { %v1013_v4 = vld [vmem:[%s3648_s9 + $0x1b0] sm:$0xff]  ;;  %v1014_v5 = vld [vmem:[%s3648_s9 + $0x1b8] sm:$0xff]  ;;  %v1015_v8 = vld [vmem:[%s3648_s9 + $0x1c0] sm:$0xff]  ;;  %1023 = vmatpush.msra.mxu0 %v1019_v6  ;;  %1232 = vmatpush.msra.mxu1 %v1020_v7  ;;  %p3359_p0 = scmp.ne.s32.totalorder %s3357_s24, %s3358_s27  ;;  %p3364_p4 = scmp.lt.s32.totalorder %s3362_s30, %s3358_s27 }
  0x65   : > { %1442 = vmatpush.msra.mxu2 %v1017_v2  ;;  %1651 = vmatpush.msra.mxu3 %v1018_v3  ;;  %v1016_v9 = vld [vmem:[%s3648_s9 + $0x1c8] sm:$0xff]  ;;  %v1009_v10 = vld [vmem:[%s3648_s9 + $0x190] sm:$0xff]  ;;  %v1010_v11 = vld [vmem:[%s3648_s9 + $0x198] sm:$0xff] }
  0x66   : > { %v1011_v12 = vld [vmem:[%s3648_s9 + $0x1a0] sm:$0xff]  ;;  %v1012_v13 = vld [vmem:[%s3648_s9 + $0x1a8] sm:$0xff]  ;;  %1024 = vmatpush.msra.mxu0 %v1015_v8  ;;  %1233 = vmatpush.msra.mxu1 %v1016_v9  ;;  %v1005_v14 = vld [vmem:[%s3648_s9 + $0x170] sm:$0xff]  ;;  %p3360_p1 = pnand %p3359_p0, %p3487_p5  ;;  %p3365_p6 = por %p3364_p4, %p3363_p3 }
  0x67   : > { %1443 = vmatpush.msra.mxu2 %v1013_v4  ;;  %1652 = vmatpush.msra.mxu3 %v1014_v5  ;;  %v1006_v15 = vld [vmem:[%s3648_s9 + $0x178] sm:$0xff]  ;;  %v1007_v16 = vld [vmem:[%s3648_s9 + $0x180] sm:$0xff]  ;;  %v1008_v17 = vld [vmem:[%s3648_s9 + $0x188] sm:$0xff] }
  0x68   : > { %1025 = vmatpush.msra.mxu0 %v1011_v12  ;;  %1234 = vmatpush.msra.mxu1 %v1012_v13  ;;  %v1001_v18 = vld [vmem:[%s3648_s9 + $0x150] sm:$0xff]  ;;  %v1002_v19 = vld [vmem:[%s3648_s9 + $0x158] sm:$0xff]  ;;  %v1003_v20 = vld [vmem:[%s3648_s9 + $0x160] sm:$0xff]  ;;  %p3361_p2 = pneg %p3360_p1 }
  0x69   : > { %1444 = vmatpush.msra.mxu2 %v1009_v10  ;;  %1653 = vmatpush.msra.mxu3 %v1010_v11  ;;  %v1004_v21 = vld [vmem:[%s3648_s9 + $0x168] sm:$0xff]  ;;  %v997_v22 = vld [vmem:[%s3648_s9 + $0x130] sm:$0xff]  ;;  %v998_v23 = vld [vmem:[%s3648_s9 + $0x138] sm:$0xff] }
  0x6a   : > { %1026 = vmatpush.msra.mxu0 %v1007_v16  ;;  %1235 = vmatpush.msra.mxu1 %v1008_v17  ;;  %v999_v24 = vld [vmem:[%s3648_s9 + $0x140] sm:$0xff]  ;;  %v1000_v25 = vld [vmem:[%s3648_s9 + $0x148] sm:$0xff]  ;;  %v993_v26 = vld [vmem:[%s3648_s9 + $0x110] sm:$0xff]  ;;  %v3766_v17 = vstv %s2630_s8  ;;  %p3366_p7 = pnand %p3365_p6, %p3361_p2 }
  0x6b   : > { %1445 = vmatpush.msra.mxu2 %v1005_v14  ;;  %1654 = vmatpush.msra.mxu3 %v1006_v15  ;;  %v994_v27 = vld [vmem:[%s3648_s9 + $0x118] sm:$0xff]  ;;  %v995_v28 = vld [vmem:[%s3648_s9 + $0x120] sm:$0xff]  ;;  %v996_v29 = vld [vmem:[%s3648_s9 + $0x128] sm:$0xff] }
  0x6c   : > { %1027 = vmatpush.msra.mxu0 %v1003_v20  ;;  %1236 = vmatpush.msra.mxu1 %v1004_v21  ;;  %v989_v30 = vld [vmem:[%s3648_s9 + $0xf0] sm:$0xff]  ;;  %v990_v31 = vld [vmem:[%s3648_s9 + $0xf8] sm:$0xff]  ;;  %v991_v32 = vld [vmem:[%s3648_s9 + $0x100] sm:$0xff] }
  0x6d   : > { %1446 = vmatpush.msra.mxu2 %v1001_v18  ;;  %1655 = vmatpush.msra.mxu3 %v1002_v19  ;;  %v992_v33 = vld [vmem:[%s3648_s9 + $0x108] sm:$0xff]  ;;  %v985_v34 = vld [vmem:[%s3648_s9 + $0xd0] sm:$0xff]  ;;  %v986_v35 = vld [vmem:[%s3648_s9 + $0xd8] sm:$0xff] }
  0x6e   : > { %1028 = vmatpush.msra.mxu0 %v999_v24  ;;  %1237 = vmatpush.msra.mxu1 %v1000_v25  ;;  %v987_v36 = vld [vmem:[%s3648_s9 + $0xe0] sm:$0xff]  ;;  %v988_v37 = vld [vmem:[%s3648_s9 + $0xe8] sm:$0xff]  ;;  %v981_v38 = vld [vmem:[%s3648_s9 + $0xb0] sm:$0xff] }
  0x6f   : > { %1447 = vmatpush.msra.mxu2 %v997_v22  ;;  %1656 = vmatpush.msra.mxu3 %v998_v23  ;;  %v982_v39 = vld [vmem:[%s3648_s9 + $0xb8] sm:$0xff]  ;;  %v983_v40 = vld [vmem:[%s3648_s9 + $0xc0] sm:$0xff]  ;;  %v984_v41 = vld [vmem:[%s3648_s9 + $0xc8] sm:$0xff] }
  0x70   : > { %1029 = vmatpush.msra.mxu0 %v995_v28  ;;  %1238 = vmatpush.msra.mxu1 %v996_v29  ;;  %v977_v42 = vld [vmem:[%s3648_s9 + $0x90] sm:$0xff]  ;;  %v978_v43 = vld [vmem:[%s3648_s9 + $0x98] sm:$0xff]  ;;  %v979_v44 = vld [vmem:[%s3648_s9 + $0xa0] sm:$0xff] }
  0x71   : > { %1448 = vmatpush.msra.mxu2 %v993_v26  ;;  %1657 = vmatpush.msra.mxu3 %v994_v27  ;;  %v980_v45 = vld [vmem:[%s3648_s9 + $0xa8] sm:$0xff]  ;;  %v973_v46 = vld [vmem:[%s3648_s9 + $0x70] sm:$0xff]  ;;  %v974_v47 = vld [vmem:[%s3648_s9 + $0x78] sm:$0xff] }
  0x72   : > { %1030 = vmatpush.msra.mxu0 %v991_v32  ;;  %1239 = vmatpush.msra.mxu1 %v992_v33  ;;  %v975_v48 = vld [vmem:[%s3648_s9 + $0x80] sm:$0xff]  ;;  %v976_v49 = vld [vmem:[%s3648_s9 + $0x88] sm:$0xff]  ;;  %v969_v50 = vld [vmem:[%s3648_s9 + $0x50] sm:$0xff] }
  0x73   : > { %1449 = vmatpush.msra.mxu2 %v989_v30  ;;  %1658 = vmatpush.msra.mxu3 %v990_v31  ;;  %v970_v51 = vld [vmem:[%s3648_s9 + $0x58] sm:$0xff]  ;;  %v971_v52 = vld [vmem:[%s3648_s9 + $0x60] sm:$0xff]  ;;  %v972_v53 = vld [vmem:[%s3648_s9 + $0x68] sm:$0xff] }
  0x74   : > { %1031 = vmatpush.msra.mxu0 %v987_v36  ;;  %1240 = vmatpush.msra.mxu1 %v988_v37  ;;  %v965_v54 = vld [vmem:[%s3648_s9 + $0x30] sm:$0xff]  ;;  %v966_v55 = vld [vmem:[%s3648_s9 + $0x38] sm:$0xff]  ;;  %v967_v56 = vld [vmem:[%s3648_s9 + $0x40] sm:$0xff] }
  0x75   : > { %1450 = vmatpush.msra.mxu2 %v985_v34  ;;  %1659 = vmatpush.msra.mxu3 %v986_v35  ;;  %v968_v57 = vld [vmem:[%s3648_s9 + $0x48] sm:$0xff]  ;;  %v961_v58 = vld [vmem:[%s3648_s9 + $0x10] sm:$0xff]  ;;  %v962_v59 = vld [vmem:[%s3648_s9 + $0x18] sm:$0xff] }
  0x76   : > { %1032 = vmatpush.msra.mxu0 %v983_v40  ;;  %1241 = vmatpush.msra.mxu1 %v984_v41  ;;  %v895_v60 = vld [vmem:[%s4462_s0] sm:$0xff]  ;;  %v964_v62 = vld [vmem:[%s3648_s9 + $0x28] sm:$0xff]  ;;  %v897_v2 = vld [vmem:[%s4462_s0 + $0x10] sm:$0xff] }
  0x77   : > { %1451 = vmatpush.msra.mxu2 %v981_v38  ;;  %1660 = vmatpush.msra.mxu3 %v982_v39  ;;  %v963_v61 = vld [vmem:[%s3648_s9 + $0x20] sm:$0xff]  ;;  %v960_v0 = vld [vmem:[%s3648_s9 + $0x8] sm:$0xff]  ;;  %v898_v3 = vld [vmem:[%s4462_s0 + $0x18] sm:$0xff] }
  0x78   : > { %1033 = vmatpush.msra.mxu0 %v979_v44  ;;  %1242 = vmatpush.msra.mxu1 %v980_v45  ;;  %v959_v63 = vld [vmem:[%s3648_s9] sm:$0xff]  ;;  %v896_v1 = vld [vmem:[%s4462_s0 + $0x8] sm:$0xff]  ;;  %v901_v6 = vld [vmem:[%s4462_s0 + $0x30] sm:$0xff] }
  0x79   : > { %1452 = vmatpush.msra.mxu2 %v977_v42  ;;  %1661 = vmatpush.msra.mxu3 %v978_v43  ;;  %v899_v4 = vld [vmem:[%s4462_s0 + $0x20] sm:$0xff]  ;;  %v900_v5 = vld [vmem:[%s4462_s0 + $0x28] sm:$0xff]  ;;  %v902_v7 = vld [vmem:[%s4462_s0 + $0x38] sm:$0xff] }
  0x7a   : > { %1034 = vmatpush.msra.mxu0 %v975_v48  ;;  %1243 = vmatpush.msra.mxu1 %v976_v49  ;;  %v903_v8 = vld [vmem:[%s4462_s0 + $0x40] sm:$0xff]  ;;  %v904_v9 = vld [vmem:[%s4462_s0 + $0x48] sm:$0xff]  ;;  %v905_v10 = vld [vmem:[%s4462_s0 + $0x50] sm:$0xff] }
  0x7b   : > { %1453 = vmatpush.msra.mxu2 %v973_v46  ;;  %1662 = vmatpush.msra.mxu3 %v974_v47  ;;  %v906_v11 = vld [vmem:[%s4462_s0 + $0x58] sm:$0xff]  ;;  %v907_v12 = vld [vmem:[%s4462_s0 + $0x60] sm:$0xff]  ;;  %v908_v13 = vld [vmem:[%s4462_s0 + $0x68] sm:$0xff] }
  0x7c   : > { %1035 = vmatpush.msra.mxu0 %v971_v52  ;;  %1244 = vmatpush.msra.mxu1 %v972_v53  ;;  %v909_v14 = vld [vmem:[%s4462_s0 + $0x70] sm:$0xff]  ;;  %v910_v15 = vld [vmem:[%s4462_s0 + $0x78] sm:$0xff]  ;;  %v911_v16 = vld [vmem:[%s4462_s0 + $0x80] sm:$0xff] }
  0x7d   : > { %1454 = vmatpush.msra.mxu2 %v969_v50  ;;  %1663 = vmatpush.msra.mxu3 %v970_v51  ;;  %v912_v26 = vld [vmem:[%s4462_s0 + $0x88] sm:$0xff]  ;;  %v913_v35 = vld [vmem:[%s4462_s0 + $0x90] sm:$0xff]  ;;  %v914_v44 = vld [vmem:[%s4462_s0 + $0x98] sm:$0xff] }
  0x7e   : > { %1036 = vmatpush.msra.mxu0 %v967_v56  ;;  %1245 = vmatpush.msra.mxu1 %v968_v57  ;;  %v915_v53 = vld [vmem:[%s4462_s0 + $0xa0] sm:$0xff] }
  0x7f   : > { %1455 = vmatpush.msra.mxu2 %v965_v54  ;;  %1664 = vmatpush.msra.mxu3 %v966_v55 }
  0x80   : > { %1037 = vmatpush.msra.mxu0 %v963_v61  ;;  %1246 = vmatpush.msra.mxu1 %v964_v62  ;;  %v916_v62 = vld [vmem:[%s4462_s0 + $0xa8] sm:$0xff] }
  0x81   : > { %1456 = vmatpush.msra.mxu2 %v961_v58  ;;  %1665 = vmatpush.msra.mxu3 %v962_v59 }
  0x82   : > { %1457 = vmatmul.f32.vlgmr.msra.gmra.mxu2 %v895_v60  ;;  %1666 = vmatmul.f32.vlgmr.msra.gmra.mxu3 %v895_v60 }
  0x83   : > { %1038 = vmatpush.msra.mxu0 %v959_v63  ;;  %1247 = vmatpush.msra.mxu1 %v960_v0 }
  0x84   : > { %1039 = vmatmul.f32.vlgmr.msra.gmra.mxu0 %v895_v60  ;;  %1248 = vmatmul.f32.vlgmr.msra.gmra.mxu1 %v895_v60 }
  0x8a   : > { %1460 = vmatmul.f32.gmra.mxu2 %v896_v1  ;;  %1669 = vmatmul.f32.gmra.mxu3 %v896_v1 }
  0x8c   : > { %1042 = vmatmul.f32.gmra.mxu0 %v896_v1  ;;  %1251 = vmatmul.f32.gmra.mxu1 %v896_v1 }
  0x92   : > { %1463 = vmatmul.f32.gmra.mxu2 %v897_v2  ;;  %1672 = vmatmul.f32.gmra.mxu3 %v897_v2 }
  0x94   : > { %1045 = vmatmul.f32.gmra.mxu0 %v897_v2  ;;  %1254 = vmatmul.f32.gmra.mxu1 %v897_v2 }
  0x9a   : > { %1466 = vmatmul.f32.gmra.mxu2 %v898_v3  ;;  %1675 = vmatmul.f32.gmra.mxu3 %v898_v3 }
  0x9c   : > { %1048 = vmatmul.f32.gmra.mxu0 %v898_v3  ;;  %1257 = vmatmul.f32.gmra.mxu1 %v898_v3 }
  0xa2   : > { %1469 = vmatmul.f32.gmra.mxu2 %v899_v4  ;;  %1678 = vmatmul.f32.gmra.mxu3 %v899_v4 }
  0xa4   : > { %1051 = vmatmul.f32.gmra.mxu0 %v899_v4  ;;  %1260 = vmatmul.f32.gmra.mxu1 %v899_v4 }
  0xaa   : > { %1472 = vmatmul.f32.gmra.mxu2 %v900_v5  ;;  %1681 = vmatmul.f32.gmra.mxu3 %v900_v5 }
  0xac   : > { %1054 = vmatmul.f32.gmra.mxu0 %v900_v5  ;;  %1263 = vmatmul.f32.gmra.mxu1 %v900_v5 }
  0xb2   : > { %1475 = vmatmul.f32.gmra.mxu2 %v901_v6  ;;  %1684 = vmatmul.f32.gmra.mxu3 %v901_v6 }
  0xb4   : > { %1057 = vmatmul.f32.gmra.mxu0 %v901_v6  ;;  %1266 = vmatmul.f32.gmra.mxu1 %v901_v6 }
  0xba   : > { %1478 = vmatmul.f32.gmra.mxu2 %v902_v7  ;;  %1687 = vmatmul.f32.gmra.mxu3 %v902_v7 }
  0xbc   : > { %1060 = vmatmul.f32.gmra.mxu0 %v902_v7  ;;  %1269 = vmatmul.f32.gmra.mxu1 %v902_v7  ;;  %v917_v7 = vld [vmem:[%s4462_s0 + $0xb0] sm:$0xff] }
  0xc2   : > { %1481 = vmatmul.f32.gmra.mxu2 %v903_v8  ;;  %1690 = vmatmul.f32.gmra.mxu3 %v903_v8 }
  0xc4   : > { %1063 = vmatmul.f32.gmra.mxu0 %v903_v8  ;;  %1272 = vmatmul.f32.gmra.mxu1 %v903_v8 }
  0xca   : > { %1484 = vmatmul.f32.gmra.mxu2 %v904_v9  ;;  %1693 = vmatmul.f32.gmra.mxu3 %v904_v9 }
  0xcc   : > { %1066 = vmatmul.f32.gmra.mxu0 %v904_v9  ;;  %1275 = vmatmul.f32.gmra.mxu1 %v904_v9 }
  0xd2   : > { %1487 = vmatmul.f32.gmra.mxu2 %v905_v10  ;;  %1696 = vmatmul.f32.gmra.mxu3 %v905_v10 }
  0xd4   : > { %1069 = vmatmul.f32.gmra.mxu0 %v905_v10  ;;  %1278 = vmatmul.f32.gmra.mxu1 %v905_v10 }
  0xda   : > { %1490 = vmatmul.f32.gmra.mxu2 %v906_v11  ;;  %1699 = vmatmul.f32.gmra.mxu3 %v906_v11 }
  0xdc   : > { %1072 = vmatmul.f32.gmra.mxu0 %v906_v11  ;;  %1281 = vmatmul.f32.gmra.mxu1 %v906_v11 }
  0xe2   : > { %1493 = vmatmul.f32.gmra.mxu2 %v907_v12  ;;  %1702 = vmatmul.f32.gmra.mxu3 %v907_v12 }
  0xe4   : > { %1075 = vmatmul.f32.gmra.mxu0 %v907_v12  ;;  %1284 = vmatmul.f32.gmra.mxu1 %v907_v12 }
  0xea   : > { %1496 = vmatmul.f32.gmra.mxu2 %v908_v13  ;;  %1705 = vmatmul.f32.gmra.mxu3 %v908_v13 }
  0xec   : > { %1078 = vmatmul.f32.gmra.mxu0 %v908_v13  ;;  %1287 = vmatmul.f32.gmra.mxu1 %v908_v13 }
  0xf2   : > { %1499 = vmatmul.f32.gmra.mxu2 %v909_v14  ;;  %1708 = vmatmul.f32.gmra.mxu3 %v909_v14 }
  0xf4   : > { %1081 = vmatmul.f32.gmra.mxu0 %v909_v14  ;;  %1290 = vmatmul.f32.gmra.mxu1 %v909_v14 }
  0xfa   : > { %1502 = vmatmul.f32.gmra.mxu2 %v910_v15  ;;  %1711 = vmatmul.f32.gmra.mxu3 %v910_v15 }
  0xfc   : > { %1084 = vmatmul.f32.gmra.mxu0 %v910_v15  ;;  %1293 = vmatmul.f32.gmra.mxu1 %v910_v15 }
 0x101   : > { %v1040_v18 = vpop.f32.mrf.mxu0  ;;  %v1249_v19 = vpop.f32.mrf.mxu1 }
 0x102   : > { %1505 = vmatmul.f32.gmra.mxu2 %v911_v16  ;;  %1714 = vmatmul.f32.gmra.mxu3 %v911_v16  ;;  %v2632_v20 = vadd.f32 %v3766_v17, %v1040_v18  ;;  %v2633_v21 = vadd.f32 %v3766_v17, %v1249_v19 }
 0x104   : > { %2888 = vst [vmem:[%s3770_s12] sm:$0xff] %v2632_v20  ;;  %1087 = vmatmul.f32.gmra.mxu0 %v911_v16  ;;  %1296 = vmatmul.f32.gmra.mxu1 %v911_v16  ;;  %v918_v16 = vld [vmem:[%s4462_s0 + $0xb8] sm:$0xff] }
 0x105   : > { %v1458_v22 = vpop.f32.mrf.mxu2  ;;  %v1667_v23 = vpop.f32.mrf.mxu3  ;;  %2889 = vst [vmem:[%s3770_s12 + $0x8] sm:$0xff] %v2633_v21 }
 0x106   : > { %v2634_v24 = vadd.f32 %v3766_v17, %v1458_v22  ;;  %v2635_v25 = vadd.f32 %v3766_v17, %v1667_v23 }
 0x108   : > { %2890 = vst [vmem:[%s3770_s12 + $0x10] sm:$0xff] %v2634_v24 }
 0x109   : > { %2891 = vst [vmem:[%s3770_s12 + $0x18] sm:$0xff] %v2635_v25  ;;  %v1043_v27 = vpop.f32.mrf.mxu0  ;;  %v1252_v28 = vpop.f32.mrf.mxu1 }
 0x10a   : > { %1508 = vmatmul.f32.gmra.mxu2 %v912_v26  ;;  %1717 = vmatmul.f32.gmra.mxu3 %v912_v26  ;;  %v2636_v29 = vadd.f32 %v3766_v17, %v1043_v27  ;;  %v2637_v30 = vadd.f32 %v3766_v17, %v1252_v28 }
 0x10c   : > { %2892 = vst [vmem:[%s3770_s12 + $0x20] sm:$0xff] %v2636_v29  ;;  %1090 = vmatmul.f32.gmra.mxu0 %v912_v26  ;;  %1299 = vmatmul.f32.gmra.mxu1 %v912_v26  ;;  %v919_v26 = vld [vmem:[%s4462_s0 + $0xc0] sm:$0xff] }
 0x10d   : > { %v1461_v31 = vpop.f32.mrf.mxu2  ;;  %v1670_v32 = vpop.f32.mrf.mxu3  ;;  %2893 = vst [vmem:[%s3770_s12 + $0x28] sm:$0xff] %v2637_v30 }
 0x10e   : > { %v2638_v33 = vadd.f32 %v3766_v17, %v1461_v31  ;;  %v2639_v34 = vadd.f32 %v3766_v17, %v1670_v32 }
 0x110   : > { %2894 = vst [vmem:[%s3770_s12 + $0x30] sm:$0xff] %v2638_v33 }
 0x111   : > { %2895 = vst [vmem:[%s3770_s12 + $0x38] sm:$0xff] %v2639_v34  ;;  %v1046_v36 = vpop.f32.mrf.mxu0  ;;  %v1255_v37 = vpop.f32.mrf.mxu1 }
 0x112   : > { %1511 = vmatmul.f32.gmra.mxu2 %v913_v35  ;;  %1720 = vmatmul.f32.gmra.mxu3 %v913_v35  ;;  %v2640_v38 = vadd.f32 %v3766_v17, %v1046_v36  ;;  %v2641_v39 = vadd.f32 %v3766_v17, %v1255_v37 }
 0x114   : > { %2896 = vst [vmem:[%s3770_s12 + $0x40] sm:$0xff] %v2640_v38  ;;  %1093 = vmatmul.f32.gmra.mxu0 %v913_v35  ;;  %1302 = vmatmul.f32.gmra.mxu1 %v913_v35  ;;  %v920_v35 = vld [vmem:[%s4462_s0 + $0xc8] sm:$0xff] }
 0x115   : > { %v1464_v40 = vpop.f32.mrf.mxu2  ;;  %v1673_v41 = vpop.f32.mrf.mxu3  ;;  %2897 = vst [vmem:[%s3770_s12 + $0x48] sm:$0xff] %v2641_v39 }
 0x116   : > { %v2642_v42 = vadd.f32 %v3766_v17, %v1464_v40  ;;  %v2643_v43 = vadd.f32 %v3766_v17, %v1673_v41 }
 0x118   : > { %2898 = vst [vmem:[%s3770_s12 + $0x50] sm:$0xff] %v2642_v42 }
 0x119   : > { %2899 = vst [vmem:[%s3770_s12 + $0x58] sm:$0xff] %v2643_v43  ;;  %v1049_v45 = vpop.f32.mrf.mxu0  ;;  %v1258_v46 = vpop.f32.mrf.mxu1 }
 0x11a   : > { %1514 = vmatmul.f32.gmra.mxu2 %v914_v44  ;;  %1723 = vmatmul.f32.gmra.mxu3 %v914_v44  ;;  %v2644_v47 = vadd.f32 %v3766_v17, %v1049_v45  ;;  %v2645_v48 = vadd.f32 %v3766_v17, %v1258_v46 }
 0x11c   : > { %2900 = vst [vmem:[%s3770_s12 + $0x60] sm:$0xff] %v2644_v47  ;;  %1096 = vmatmul.f32.gmra.mxu0 %v914_v44  ;;  %1305 = vmatmul.f32.gmra.mxu1 %v914_v44  ;;  %v921_v44 = vld [vmem:[%s4462_s0 + $0xd0] sm:$0xff] }
 0x11d   : > { %v1467_v49 = vpop.f32.mrf.mxu2  ;;  %v1676_v50 = vpop.f32.mrf.mxu3  ;;  %2901 = vst [vmem:[%s3770_s12 + $0x68] sm:$0xff] %v2645_v48 }
 0x11e   : > { %v2646_v51 = vadd.f32 %v3766_v17, %v1467_v49  ;;  %v2647_v52 = vadd.f32 %v3766_v17, %v1676_v50 }
 0x120   : > { %2902 = vst [vmem:[%s3770_s12 + $0x70] sm:$0xff] %v2646_v51 }
 0x121   : > { %2903 = vst [vmem:[%s3770_s12 + $0x78] sm:$0xff] %v2647_v52  ;;  %v1052_v54 = vpop.f32.mrf.mxu0  ;;  %v1261_v55 = vpop.f32.mrf.mxu1 }
 0x122   : > { %1517 = vmatmul.f32.gmra.mxu2 %v915_v53  ;;  %1726 = vmatmul.f32.gmra.mxu3 %v915_v53  ;;  %v2648_v56 = vadd.f32 %v3766_v17, %v1052_v54  ;;  %v2649_v57 = vadd.f32 %v3766_v17, %v1261_v55 }
 0x124   : > { %2904 = vst [vmem:[%s3770_s12 + $0x80] sm:$0xff] %v2648_v56  ;;  %1099 = vmatmul.f32.gmra.mxu0 %v915_v53  ;;  %1308 = vmatmul.f32.gmra.mxu1 %v915_v53  ;;  %v922_v53 = vld [vmem:[%s4462_s0 + $0xd8] sm:$0xff] }
 0x125   : > { %v1470_v58 = vpop.f32.mrf.mxu2  ;;  %v1679_v59 = vpop.f32.mrf.mxu3  ;;  %2905 = vst [vmem:[%s3770_s12 + $0x88] sm:$0xff] %v2649_v57 }
 0x126   : > { %v2650_v60 = vadd.f32 %v3766_v17, %v1470_v58  ;;  %v2651_v61 = vadd.f32 %v3766_v17, %v1679_v59 }
 0x128   : > { %2906 = vst [vmem:[%s3770_s12 + $0x90] sm:$0xff] %v2650_v60 }
 0x129   : > { %2907 = vst [vmem:[%s3770_s12 + $0x98] sm:$0xff] %v2651_v61  ;;  %v1055_v63 = vpop.f32.mrf.mxu0  ;;  %v1264_v0 = vpop.f32.mrf.mxu1 }
 0x12a   : > { %1520 = vmatmul.f32.gmra.mxu2 %v916_v62  ;;  %1729 = vmatmul.f32.gmra.mxu3 %v916_v62  ;;  %v2652_v1 = vadd.f32 %v3766_v17, %v1055_v63  ;;  %v2653_v2 = vadd.f32 %v3766_v17, %v1264_v0 }
 0x12c   : > { %2908 = vst [vmem:[%s3770_s12 + $0xa0] sm:$0xff] %v2652_v1  ;;  %1102 = vmatmul.f32.gmra.mxu0 %v916_v62  ;;  %1311 = vmatmul.f32.gmra.mxu1 %v916_v62  ;;  %v923_v62 = vld [vmem:[%s4462_s0 + $0xe0] sm:$0xff] }
 0x12d   : > { %v1473_v3 = vpop.f32.mrf.mxu2  ;;  %v1682_v4 = vpop.f32.mrf.mxu3  ;;  %2909 = vst [vmem:[%s3770_s12 + $0xa8] sm:$0xff] %v2653_v2 }
 0x12e   : > { %v2654_v5 = vadd.f32 %v3766_v17, %v1473_v3  ;;  %v2655_v6 = vadd.f32 %v3766_v17, %v1682_v4 }
 0x130   : > { %2910 = vst [vmem:[%s3770_s12 + $0xb0] sm:$0xff] %v2654_v5 }
 0x131   : > { %2911 = vst [vmem:[%s3770_s12 + $0xb8] sm:$0xff] %v2655_v6  ;;  %v1058_v8 = vpop.f32.mrf.mxu0  ;;  %v1267_v9 = vpop.f32.mrf.mxu1 }
 0x132   : > { %1523 = vmatmul.f32.gmra.mxu2 %v917_v7  ;;  %1732 = vmatmul.f32.gmra.mxu3 %v917_v7  ;;  %v2656_v10 = vadd.f32 %v3766_v17, %v1058_v8  ;;  %v2657_v11 = vadd.f32 %v3766_v17, %v1267_v9 }
 0x134   : > { %2912 = vst [vmem:[%s3770_s12 + $0xc0] sm:$0xff] %v2656_v10  ;;  %1105 = vmatmul.f32.gmra.mxu0 %v917_v7  ;;  %1314 = vmatmul.f32.gmra.mxu1 %v917_v7  ;;  %v924_v7 = vld [vmem:[%s4462_s0 + $0xe8] sm:$0xff] }
 0x135   : > { %v1476_v12 = vpop.f32.mrf.mxu2  ;;  %v1685_v13 = vpop.f32.mrf.mxu3  ;;  %2913 = vst [vmem:[%s3770_s12 + $0xc8] sm:$0xff] %v2657_v11 }
 0x136   : > { %v2658_v14 = vadd.f32 %v3766_v17, %v1476_v12  ;;  %v2659_v15 = vadd.f32 %v3766_v17, %v1685_v13 }
 0x138   : > { %2914 = vst [vmem:[%s3770_s12 + $0xd0] sm:$0xff] %v2658_v14 }
 0x139   : > { %2915 = vst [vmem:[%s3770_s12 + $0xd8] sm:$0xff] %v2659_v15  ;;  %v1061_v18 = vpop.f32.mrf.mxu0  ;;  %v1270_v19 = vpop.f32.mrf.mxu1 }
 0x13a   : > { %1526 = vmatmul.f32.gmra.mxu2 %v918_v16  ;;  %1735 = vmatmul.f32.gmra.mxu3 %v918_v16  ;;  %v2660_v20 = vadd.f32 %v3766_v17, %v1061_v18  ;;  %v2661_v21 = vadd.f32 %v3766_v17, %v1270_v19 }
 0x13c   : > { %2916 = vst [vmem:[%s3770_s12 + $0xe0] sm:$0xff] %v2660_v20  ;;  %1108 = vmatmul.f32.gmra.mxu0 %v918_v16  ;;  %1317 = vmatmul.f32.gmra.mxu1 %v918_v16  ;;  %v925_v16 = vld [vmem:[%s4462_s0 + $0xf0] sm:$0xff] }
 0x13d   : > { %v1479_v22 = vpop.f32.mrf.mxu2  ;;  %v1688_v23 = vpop.f32.mrf.mxu3  ;;  %2917 = vst [vmem:[%s3770_s12 + $0xe8] sm:$0xff] %v2661_v21 }
 0x13e   : > { %v2662_v24 = vadd.f32 %v3766_v17, %v1479_v22  ;;  %v2663_v25 = vadd.f32 %v3766_v17, %v1688_v23 }
 0x140   : > { %2918 = vst [vmem:[%s3770_s12 + $0xf0] sm:$0xff] %v2662_v24 }
 0x141   : > { %2919 = vst [vmem:[%s3770_s12 + $0xf8] sm:$0xff] %v2663_v25  ;;  %v1064_v27 = vpop.f32.mrf.mxu0  ;;  %v1273_v28 = vpop.f32.mrf.mxu1 }
 0x142   : > { %1529 = vmatmul.f32.gmra.mxu2 %v919_v26  ;;  %1738 = vmatmul.f32.gmra.mxu3 %v919_v26  ;;  %v2664_v29 = vadd.f32 %v3766_v17, %v1064_v27  ;;  %v2665_v30 = vadd.f32 %v3766_v17, %v1273_v28 }
 0x144   : > { %2920 = vst [vmem:[%s3770_s12 + $0x100] sm:$0xff] %v2664_v29  ;;  %1111 = vmatmul.f32.gmra.mxu0 %v919_v26  ;;  %1320 = vmatmul.f32.gmra.mxu1 %v919_v26  ;;  %v926_v26 = vld [vmem:[%s4462_s0 + $0xf8] sm:$0xff] }
 0x145   : > { %v1482_v31 = vpop.f32.mrf.mxu2  ;;  %v1691_v32 = vpop.f32.mrf.mxu3  ;;  %2921 = vst [vmem:[%s3770_s12 + $0x108] sm:$0xff] %v2665_v30 }
 0x146   : > { %v2666_v33 = vadd.f32 %v3766_v17, %v1482_v31  ;;  %v2667_v34 = vadd.f32 %v3766_v17, %v1691_v32 }
 0x148   : > { %2922 = vst [vmem:[%s3770_s12 + $0x110] sm:$0xff] %v2666_v33 }
 0x149   : > { %2923 = vst [vmem:[%s3770_s12 + $0x118] sm:$0xff] %v2667_v34  ;;  %v1067_v36 = vpop.f32.mrf.mxu0  ;;  %v1276_v37 = vpop.f32.mrf.mxu1 }
 0x14a   : > { %1532 = vmatmul.f32.gmra.mxu2 %v920_v35  ;;  %1741 = vmatmul.f32.gmra.mxu3 %v920_v35  ;;  %v2668_v38 = vadd.f32 %v3766_v17, %v1067_v36  ;;  %v2669_v39 = vadd.f32 %v3766_v17, %v1276_v37 }
 0x14c   : > { %2924 = vst [vmem:[%s3770_s12 + $0x120] sm:$0xff] %v2668_v38  ;;  %1114 = vmatmul.f32.gmra.mxu0 %v920_v35  ;;  %1323 = vmatmul.f32.gmra.mxu1 %v920_v35  ;;  %v927_v35 = vld [vmem:[%s4462_s0 + $0x100] sm:$0xff] }
 0x14d   : > { %v1485_v40 = vpop.f32.mrf.mxu2  ;;  %v1694_v41 = vpop.f32.mrf.mxu3  ;;  %2925 = vst [vmem:[%s3770_s12 + $0x128] sm:$0xff] %v2669_v39 }
 0x14e   : > { %v2670_v42 = vadd.f32 %v3766_v17, %v1485_v40  ;;  %v2671_v43 = vadd.f32 %v3766_v17, %v1694_v41 }
 0x150   : > { %2926 = vst [vmem:[%s3770_s12 + $0x130] sm:$0xff] %v2670_v42 }
 0x151   : > { %2927 = vst [vmem:[%s3770_s12 + $0x138] sm:$0xff] %v2671_v43  ;;  %v1070_v45 = vpop.f32.mrf.mxu0  ;;  %v1279_v46 = vpop.f32.mrf.mxu1 }
 0x152   : > { %1535 = vmatmul.f32.gmra.mxu2 %v921_v44  ;;  %1744 = vmatmul.f32.gmra.mxu3 %v921_v44  ;;  %v2672_v47 = vadd.f32 %v3766_v17, %v1070_v45  ;;  %v2673_v48 = vadd.f32 %v3766_v17, %v1279_v46 }
 0x154   : > { %2928 = vst [vmem:[%s3770_s12 + $0x140] sm:$0xff] %v2672_v47  ;;  %1117 = vmatmul.f32.gmra.mxu0 %v921_v44  ;;  %1326 = vmatmul.f32.gmra.mxu1 %v921_v44  ;;  %v928_v44 = vld [vmem:[%s4462_s0 + $0x108] sm:$0xff] }
 0x155   : > { %v1488_v49 = vpop.f32.mrf.mxu2  ;;  %v1697_v50 = vpop.f32.mrf.mxu3  ;;  %2929 = vst [vmem:[%s3770_s12 + $0x148] sm:$0xff] %v2673_v48 }
 0x156   : > { %v2674_v51 = vadd.f32 %v3766_v17, %v1488_v49  ;;  %v2675_v52 = vadd.f32 %v3766_v17, %v1697_v50 }
 0x158   : > { %2930 = vst [vmem:[%s3770_s12 + $0x150] sm:$0xff] %v2674_v51 }
 0x159   : > { %2931 = vst [vmem:[%s3770_s12 + $0x158] sm:$0xff] %v2675_v52  ;;  %v1073_v54 = vpop.f32.mrf.mxu0  ;;  %v1282_v55 = vpop.f32.mrf.mxu1 }
 0x15a   : > { %1538 = vmatmul.f32.gmra.mxu2 %v922_v53  ;;  %1747 = vmatmul.f32.gmra.mxu3 %v922_v53  ;;  %v2676_v56 = vadd.f32 %v3766_v17, %v1073_v54  ;;  %v2677_v57 = vadd.f32 %v3766_v17, %v1282_v55 }
 0x15c   : > { %2932 = vst [vmem:[%s3770_s12 + $0x160] sm:$0xff] %v2676_v56  ;;  %1120 = vmatmul.f32.gmra.mxu0 %v922_v53  ;;  %1329 = vmatmul.f32.gmra.mxu1 %v922_v53  ;;  %v929_v53 = vld [vmem:[%s4462_s0 + $0x110] sm:$0xff] }
 0x15d   : > { %v1491_v58 = vpop.f32.mrf.mxu2  ;;  %v1700_v59 = vpop.f32.mrf.mxu3  ;;  %2933 = vst [vmem:[%s3770_s12 + $0x168] sm:$0xff] %v2677_v57 }
 0x15e   : > { %v2678_v60 = vadd.f32 %v3766_v17, %v1491_v58  ;;  %v2679_v61 = vadd.f32 %v3766_v17, %v1700_v59 }
 0x160   : > { %2934 = vst [vmem:[%s3770_s12 + $0x170] sm:$0xff] %v2678_v60 }
 0x161   : > { %2935 = vst [vmem:[%s3770_s12 + $0x178] sm:$0xff] %v2679_v61  ;;  %v1076_v63 = vpop.f32.mrf.mxu0  ;;  %v1285_v0 = vpop.f32.mrf.mxu1 }
 0x162   : > { %1541 = vmatmul.f32.gmra.mxu2 %v923_v62  ;;  %1750 = vmatmul.f32.gmra.mxu3 %v923_v62  ;;  %v2680_v1 = vadd.f32 %v3766_v17, %v1076_v63  ;;  %v2681_v2 = vadd.f32 %v3766_v17, %v1285_v0 }
 0x164   : > { %2936 = vst [vmem:[%s3770_s12 + $0x180] sm:$0xff] %v2680_v1  ;;  %1123 = vmatmul.f32.gmra.mxu0 %v923_v62  ;;  %1332 = vmatmul.f32.gmra.mxu1 %v923_v62  ;;  %v930_v62 = vld [vmem:[%s4462_s0 + $0x118] sm:$0xff] }
 0x165   : > { %v1494_v3 = vpop.f32.mrf.mxu2  ;;  %v1703_v4 = vpop.f32.mrf.mxu3  ;;  %2937 = vst [vmem:[%s3770_s12 + $0x188] sm:$0xff] %v2681_v2 }
 0x166   : > { %v2682_v5 = vadd.f32 %v3766_v17, %v1494_v3  ;;  %v2683_v6 = vadd.f32 %v3766_v17, %v1703_v4 }
 0x168   : > { %2938 = vst [vmem:[%s3770_s12 + $0x190] sm:$0xff] %v2682_v5 }
 0x169   : > { %2939 = vst [vmem:[%s3770_s12 + $0x198] sm:$0xff] %v2683_v6  ;;  %v1079_v8 = vpop.f32.mrf.mxu0  ;;  %v1288_v9 = vpop.f32.mrf.mxu1 }
 0x16a   : > { %1544 = vmatmul.f32.gmra.mxu2 %v924_v7  ;;  %1753 = vmatmul.f32.gmra.mxu3 %v924_v7  ;;  %v2684_v10 = vadd.f32 %v3766_v17, %v1079_v8  ;;  %v2685_v11 = vadd.f32 %v3766_v17, %v1288_v9 }
 0x16c   : > { %2940 = vst [vmem:[%s3770_s12 + $0x1a0] sm:$0xff] %v2684_v10  ;;  %1126 = vmatmul.f32.gmra.mxu0 %v924_v7  ;;  %1335 = vmatmul.f32.gmra.mxu1 %v924_v7  ;;  %v931_v7 = vld [vmem:[%s4462_s0 + $0x120] sm:$0xff] }
 0x16d   : > { %v1497_v12 = vpop.f32.mrf.mxu2  ;;  %v1706_v13 = vpop.f32.mrf.mxu3  ;;  %2941 = vst [vmem:[%s3770_s12 + $0x1a8] sm:$0xff] %v2685_v11 }
 0x16e   : > { %v2686_v14 = vadd.f32 %v3766_v17, %v1497_v12  ;;  %v2687_v15 = vadd.f32 %v3766_v17, %v1706_v13 }
 0x170   : > { %2942 = vst [vmem:[%s3770_s12 + $0x1b0] sm:$0xff] %v2686_v14 }
 0x171   : > { %2943 = vst [vmem:[%s3770_s12 + $0x1b8] sm:$0xff] %v2687_v15  ;;  %v1082_v18 = vpop.f32.mrf.mxu0  ;;  %v1291_v19 = vpop.f32.mrf.mxu1 }
 0x172   : > { %1547 = vmatmul.f32.gmra.mxu2 %v925_v16  ;;  %1756 = vmatmul.f32.gmra.mxu3 %v925_v16  ;;  %v2688_v20 = vadd.f32 %v3766_v17, %v1082_v18  ;;  %v2689_v21 = vadd.f32 %v3766_v17, %v1291_v19 }
 0x174   : > { %2944 = vst [vmem:[%s3770_s12 + $0x1c0] sm:$0xff] %v2688_v20  ;;  %1129 = vmatmul.f32.gmra.mxu0 %v925_v16  ;;  %1338 = vmatmul.f32.gmra.mxu1 %v925_v16  ;;  %v932_v16 = vld [vmem:[%s4462_s0 + $0x128] sm:$0xff] }
 0x175   : > { %v1500_v22 = vpop.f32.mrf.mxu2  ;;  %v1709_v23 = vpop.f32.mrf.mxu3  ;;  %2945 = vst [vmem:[%s3770_s12 + $0x1c8] sm:$0xff] %v2689_v21 }
 0x176   : > { %v2690_v24 = vadd.f32 %v3766_v17, %v1500_v22  ;;  %v2691_v25 = vadd.f32 %v3766_v17, %v1709_v23 }
 0x178   : > { %2946 = vst [vmem:[%s3770_s12 + $0x1d0] sm:$0xff] %v2690_v24 }
 0x179   : > { %2947 = vst [vmem:[%s3770_s12 + $0x1d8] sm:$0xff] %v2691_v25  ;;  %v1085_v27 = vpop.f32.mrf.mxu0  ;;  %v1294_v28 = vpop.f32.mrf.mxu1 }
 0x17a   : > { %1550 = vmatmul.f32.gmra.mxu2 %v926_v26  ;;  %1759 = vmatmul.f32.gmra.mxu3 %v926_v26  ;;  %v2692_v29 = vadd.f32 %v3766_v17, %v1085_v27  ;;  %v2693_v30 = vadd.f32 %v3766_v17, %v1294_v28 }
 0x17c   : > { %2948 = vst [vmem:[%s3770_s12 + $0x1e0] sm:$0xff] %v2692_v29  ;;  %1132 = vmatmul.f32.gmra.mxu0 %v926_v26  ;;  %1341 = vmatmul.f32.gmra.mxu1 %v926_v26  ;;  %v933_v26 = vld [vmem:[%s4462_s0 + $0x130] sm:$0xff] }
 0x17d   : > { %v1503_v31 = vpop.f32.mrf.mxu2  ;;  %v1712_v32 = vpop.f32.mrf.mxu3  ;;  %2949 = vst [vmem:[%s3770_s12 + $0x1e8] sm:$0xff] %v2693_v30 }
 0x17e   : > { %v2694_v33 = vadd.f32 %v3766_v17, %v1503_v31  ;;  %v2695_v34 = vadd.f32 %v3766_v17, %v1712_v32 }
 0x180   : > { %2950 = vst [vmem:[%s3770_s12 + $0x1f0] sm:$0xff] %v2694_v33 }
 0x181   : > { %2951 = vst [vmem:[%s3770_s12 + $0x1f8] sm:$0xff] %v2695_v34  ;;  %v1088_v36 = vpop.f32.mrf.mxu0  ;;  %v1297_v37 = vpop.f32.mrf.mxu1 }
 0x182   : > { %1553 = vmatmul.f32.gmra.mxu2 %v927_v35  ;;  %1762 = vmatmul.f32.gmra.mxu3 %v927_v35  ;;  %v2696_v38 = vadd.f32 %v3766_v17, %v1088_v36  ;;  %v2697_v39 = vadd.f32 %v3766_v17, %v1297_v37 }
 0x184   : > { %2952 = vst [vmem:[%s3770_s12 + $0x200] sm:$0xff] %v2696_v38  ;;  %1135 = vmatmul.f32.gmra.mxu0 %v927_v35  ;;  %1344 = vmatmul.f32.gmra.mxu1 %v927_v35  ;;  %v934_v35 = vld [vmem:[%s4462_s0 + $0x138] sm:$0xff] }
 0x185   : > { %v1506_v40 = vpop.f32.mrf.mxu2  ;;  %v1715_v41 = vpop.f32.mrf.mxu3  ;;  %2953 = vst [vmem:[%s3770_s12 + $0x208] sm:$0xff] %v2697_v39 }
 0x186   : > { %v2698_v42 = vadd.f32 %v3766_v17, %v1506_v40  ;;  %v2699_v43 = vadd.f32 %v3766_v17, %v1715_v41 }
 0x188   : > { %2954 = vst [vmem:[%s3770_s12 + $0x210] sm:$0xff] %v2698_v42 }
 0x189   : > { %2955 = vst [vmem:[%s3770_s12 + $0x218] sm:$0xff] %v2699_v43  ;;  %v1091_v45 = vpop.f32.mrf.mxu0  ;;  %v1300_v46 = vpop.f32.mrf.mxu1 }
 0x18a   : > { %1556 = vmatmul.f32.gmra.mxu2 %v928_v44  ;;  %1765 = vmatmul.f32.gmra.mxu3 %v928_v44  ;;  %v2700_v47 = vadd.f32 %v3766_v17, %v1091_v45  ;;  %v2701_v48 = vadd.f32 %v3766_v17, %v1300_v46 }
 0x18c   : > { %2956 = vst [vmem:[%s3770_s12 + $0x220] sm:$0xff] %v2700_v47  ;;  %1138 = vmatmul.f32.gmra.mxu0 %v928_v44  ;;  %1347 = vmatmul.f32.gmra.mxu1 %v928_v44  ;;  %v935_v44 = vld [vmem:[%s4462_s0 + $0x140] sm:$0xff] }
 0x18d   : > { %v1509_v49 = vpop.f32.mrf.mxu2  ;;  %v1718_v50 = vpop.f32.mrf.mxu3  ;;  %2957 = vst [vmem:[%s3770_s12 + $0x228] sm:$0xff] %v2701_v48 }
 0x18e   : > { %v2702_v51 = vadd.f32 %v3766_v17, %v1509_v49  ;;  %v2703_v52 = vadd.f32 %v3766_v17, %v1718_v50 }
 0x190   : > { %2958 = vst [vmem:[%s3770_s12 + $0x230] sm:$0xff] %v2702_v51 }
 0x191   : > { %2959 = vst [vmem:[%s3770_s12 + $0x238] sm:$0xff] %v2703_v52  ;;  %v1094_v54 = vpop.f32.mrf.mxu0  ;;  %v1303_v55 = vpop.f32.mrf.mxu1 }
 0x192   : > { %1559 = vmatmul.f32.gmra.mxu2 %v929_v53  ;;  %1768 = vmatmul.f32.gmra.mxu3 %v929_v53  ;;  %v2704_v56 = vadd.f32 %v3766_v17, %v1094_v54  ;;  %v2705_v57 = vadd.f32 %v3766_v17, %v1303_v55 }
 0x194   : > { %2960 = vst [vmem:[%s3770_s12 + $0x240] sm:$0xff] %v2704_v56  ;;  %1141 = vmatmul.f32.gmra.mxu0 %v929_v53  ;;  %1350 = vmatmul.f32.gmra.mxu1 %v929_v53  ;;  %v936_v53 = vld [vmem:[%s4462_s0 + $0x148] sm:$0xff] }
 0x195   : > { %v1512_v58 = vpop.f32.mrf.mxu2  ;;  %v1721_v59 = vpop.f32.mrf.mxu3  ;;  %2961 = vst [vmem:[%s3770_s12 + $0x248] sm:$0xff] %v2705_v57 }
 0x196   : > { %v2706_v60 = vadd.f32 %v3766_v17, %v1512_v58  ;;  %v2707_v61 = vadd.f32 %v3766_v17, %v1721_v59 }
 0x198   : > { %2962 = vst [vmem:[%s3770_s12 + $0x250] sm:$0xff] %v2706_v60 }
 0x199   : > { %2963 = vst [vmem:[%s3770_s12 + $0x258] sm:$0xff] %v2707_v61  ;;  %v1097_v63 = vpop.f32.mrf.mxu0  ;;  %v1306_v0 = vpop.f32.mrf.mxu1 }
 0x19a   : > { %1562 = vmatmul.f32.gmra.mxu2 %v930_v62  ;;  %1771 = vmatmul.f32.gmra.mxu3 %v930_v62  ;;  %v2708_v1 = vadd.f32 %v3766_v17, %v1097_v63  ;;  %v2709_v2 = vadd.f32 %v3766_v17, %v1306_v0 }
 0x19c   : > { %2964 = vst [vmem:[%s3770_s12 + $0x260] sm:$0xff] %v2708_v1  ;;  %1144 = vmatmul.f32.gmra.mxu0 %v930_v62  ;;  %1353 = vmatmul.f32.gmra.mxu1 %v930_v62  ;;  %v937_v62 = vld [vmem:[%s4462_s0 + $0x150] sm:$0xff] }
 0x19d   : > { %v1515_v3 = vpop.f32.mrf.mxu2  ;;  %v1724_v4 = vpop.f32.mrf.mxu3  ;;  %2965 = vst [vmem:[%s3770_s12 + $0x268] sm:$0xff] %v2709_v2 }
 0x19e   : > { %v2710_v5 = vadd.f32 %v3766_v17, %v1515_v3  ;;  %v2711_v6 = vadd.f32 %v3766_v17, %v1724_v4 }
 0x1a0   : > { %2966 = vst [vmem:[%s3770_s12 + $0x270] sm:$0xff] %v2710_v5 }
 0x1a1   : > { %2967 = vst [vmem:[%s3770_s12 + $0x278] sm:$0xff] %v2711_v6  ;;  %v1100_v8 = vpop.f32.mrf.mxu0  ;;  %v1309_v9 = vpop.f32.mrf.mxu1 }
 0x1a2   : > { %1565 = vmatmul.f32.gmra.mxu2 %v931_v7  ;;  %1774 = vmatmul.f32.gmra.mxu3 %v931_v7  ;;  %v2712_v10 = vadd.f32 %v3766_v17, %v1100_v8  ;;  %v2713_v11 = vadd.f32 %v3766_v17, %v1309_v9 }
 0x1a4   : > { %2968 = vst [vmem:[%s3770_s12 + $0x280] sm:$0xff] %v2712_v10  ;;  %1147 = vmatmul.f32.gmra.mxu0 %v931_v7  ;;  %1356 = vmatmul.f32.gmra.mxu1 %v931_v7  ;;  %v938_v7 = vld [vmem:[%s4462_s0 + $0x158] sm:$0xff] }
 0x1a5   : > { %v1518_v12 = vpop.f32.mrf.mxu2  ;;  %v1727_v13 = vpop.f32.mrf.mxu3  ;;  %2969 = vst [vmem:[%s3770_s12 + $0x288] sm:$0xff] %v2713_v11 }
 0x1a6   : > { %v2714_v14 = vadd.f32 %v3766_v17, %v1518_v12  ;;  %v2715_v15 = vadd.f32 %v3766_v17, %v1727_v13 }
 0x1a8   : > { %2970 = vst [vmem:[%s3770_s12 + $0x290] sm:$0xff] %v2714_v14 }
 0x1a9   : > { %2971 = vst [vmem:[%s3770_s12 + $0x298] sm:$0xff] %v2715_v15  ;;  %v1103_v18 = vpop.f32.mrf.mxu0  ;;  %v1312_v19 = vpop.f32.mrf.mxu1 }
 0x1aa   : > { %1568 = vmatmul.f32.gmra.mxu2 %v932_v16  ;;  %1777 = vmatmul.f32.gmra.mxu3 %v932_v16  ;;  %v2716_v20 = vadd.f32 %v3766_v17, %v1103_v18  ;;  %v2717_v21 = vadd.f32 %v3766_v17, %v1312_v19 }
 0x1ac   : > { %2972 = vst [vmem:[%s3770_s12 + $0x2a0] sm:$0xff] %v2716_v20  ;;  %1150 = vmatmul.f32.gmra.mxu0 %v932_v16  ;;  %1359 = vmatmul.f32.gmra.mxu1 %v932_v16  ;;  %v939_v16 = vld [vmem:[%s4462_s0 + $0x160] sm:$0xff] }
 0x1ad   : > { %v1521_v22 = vpop.f32.mrf.mxu2  ;;  %v1730_v23 = vpop.f32.mrf.mxu3  ;;  %2973 = vst [vmem:[%s3770_s12 + $0x2a8] sm:$0xff] %v2717_v21 }
 0x1ae   : > { %v2718_v24 = vadd.f32 %v3766_v17, %v1521_v22  ;;  %v2719_v25 = vadd.f32 %v3766_v17, %v1730_v23 }
 0x1b0   : > { %2974 = vst [vmem:[%s3770_s12 + $0x2b0] sm:$0xff] %v2718_v24 }
 0x1b1   : > { %2975 = vst [vmem:[%s3770_s12 + $0x2b8] sm:$0xff] %v2719_v25  ;;  %v1106_v27 = vpop.f32.mrf.mxu0  ;;  %v1315_v28 = vpop.f32.mrf.mxu1 }
 0x1b2   : > { %1571 = vmatmul.f32.gmra.mxu2 %v933_v26  ;;  %1780 = vmatmul.f32.gmra.mxu3 %v933_v26  ;;  %v2720_v29 = vadd.f32 %v3766_v17, %v1106_v27  ;;  %v2721_v30 = vadd.f32 %v3766_v17, %v1315_v28 }
 0x1b4   : > { %2976 = vst [vmem:[%s3770_s12 + $0x2c0] sm:$0xff] %v2720_v29  ;;  %1153 = vmatmul.f32.gmra.mxu0 %v933_v26  ;;  %1362 = vmatmul.f32.gmra.mxu1 %v933_v26  ;;  %v940_v26 = vld [vmem:[%s4462_s0 + $0x168] sm:$0xff] }
 0x1b5   : > { %v1524_v31 = vpop.f32.mrf.mxu2  ;;  %v1733_v32 = vpop.f32.mrf.mxu3  ;;  %2977 = vst [vmem:[%s3770_s12 + $0x2c8] sm:$0xff] %v2721_v30 }
 0x1b6   : > { %v2722_v33 = vadd.f32 %v3766_v17, %v1524_v31  ;;  %v2723_v34 = vadd.f32 %v3766_v17, %v1733_v32 }
 0x1b8   : > { %2978 = vst [vmem:[%s3770_s12 + $0x2d0] sm:$0xff] %v2722_v33 }
 0x1b9   : > { %2979 = vst [vmem:[%s3770_s12 + $0x2d8] sm:$0xff] %v2723_v34  ;;  %v1109_v36 = vpop.f32.mrf.mxu0  ;;  %v1318_v37 = vpop.f32.mrf.mxu1 }
 0x1ba   : > { %1574 = vmatmul.f32.gmra.mxu2 %v934_v35  ;;  %1783 = vmatmul.f32.gmra.mxu3 %v934_v35  ;;  %v2724_v38 = vadd.f32 %v3766_v17, %v1109_v36  ;;  %v2725_v39 = vadd.f32 %v3766_v17, %v1318_v37 }
 0x1bc   : > { %2980 = vst [vmem:[%s3770_s12 + $0x2e0] sm:$0xff] %v2724_v38  ;;  %1156 = vmatmul.f32.gmra.mxu0 %v934_v35  ;;  %1365 = vmatmul.f32.gmra.mxu1 %v934_v35  ;;  %v941_v35 = vld [vmem:[%s4462_s0 + $0x170] sm:$0xff] }
 0x1bd   : > { %v1527_v40 = vpop.f32.mrf.mxu2  ;;  %v1736_v41 = vpop.f32.mrf.mxu3  ;;  %2981 = vst [vmem:[%s3770_s12 + $0x2e8] sm:$0xff] %v2725_v39 }
 0x1be   : > { %v2726_v42 = vadd.f32 %v3766_v17, %v1527_v40  ;;  %v2727_v43 = vadd.f32 %v3766_v17, %v1736_v41 }
 0x1c0   : > { %2982 = vst [vmem:[%s3770_s12 + $0x2f0] sm:$0xff] %v2726_v42 }
 0x1c1   : > { %2983 = vst [vmem:[%s3770_s12 + $0x2f8] sm:$0xff] %v2727_v43  ;;  %v1112_v45 = vpop.f32.mrf.mxu0  ;;  %v1321_v46 = vpop.f32.mrf.mxu1 }
 0x1c2   : > { %1577 = vmatmul.f32.gmra.mxu2 %v935_v44  ;;  %1786 = vmatmul.f32.gmra.mxu3 %v935_v44  ;;  %v2728_v47 = vadd.f32 %v3766_v17, %v1112_v45  ;;  %v2729_v48 = vadd.f32 %v3766_v17, %v1321_v46 }
 0x1c4   : > { %2984 = vst [vmem:[%s3770_s12 + $0x300] sm:$0xff] %v2728_v47  ;;  %1159 = vmatmul.f32.gmra.mxu0 %v935_v44  ;;  %1368 = vmatmul.f32.gmra.mxu1 %v935_v44  ;;  %v942_v44 = vld [vmem:[%s4462_s0 + $0x178] sm:$0xff] }
 0x1c5   : > { %v1530_v49 = vpop.f32.mrf.mxu2  ;;  %v1739_v50 = vpop.f32.mrf.mxu3  ;;  %2985 = vst [vmem:[%s3770_s12 + $0x308] sm:$0xff] %v2729_v48 }
 0x1c6   : > { %v2730_v51 = vadd.f32 %v3766_v17, %v1530_v49  ;;  %v2731_v52 = vadd.f32 %v3766_v17, %v1739_v50 }
 0x1c8   : > { %2986 = vst [vmem:[%s3770_s12 + $0x310] sm:$0xff] %v2730_v51 }
 0x1c9   : > { %2987 = vst [vmem:[%s3770_s12 + $0x318] sm:$0xff] %v2731_v52  ;;  %v1115_v54 = vpop.f32.mrf.mxu0  ;;  %v1324_v55 = vpop.f32.mrf.mxu1 }
 0x1ca   : > { %1580 = vmatmul.f32.gmra.mxu2 %v936_v53  ;;  %1789 = vmatmul.f32.gmra.mxu3 %v936_v53  ;;  %v2732_v56 = vadd.f32 %v3766_v17, %v1115_v54  ;;  %v2733_v57 = vadd.f32 %v3766_v17, %v1324_v55 }
 0x1cc   : > { %2988 = vst [vmem:[%s3770_s12 + $0x320] sm:$0xff] %v2732_v56  ;;  %1162 = vmatmul.f32.gmra.mxu0 %v936_v53  ;;  %1371 = vmatmul.f32.gmra.mxu1 %v936_v53  ;;  %v943_v53 = vld [vmem:[%s4462_s0 + $0x180] sm:$0xff] }
 0x1cd   : > { %v1533_v58 = vpop.f32.mrf.mxu2  ;;  %v1742_v59 = vpop.f32.mrf.mxu3  ;;  %2989 = vst [vmem:[%s3770_s12 + $0x328] sm:$0xff] %v2733_v57 }
 0x1ce   : > { %v2734_v60 = vadd.f32 %v3766_v17, %v1533_v58  ;;  %v2735_v61 = vadd.f32 %v3766_v17, %v1742_v59 }
 0x1d0   : > { %2990 = vst [vmem:[%s3770_s12 + $0x330] sm:$0xff] %v2734_v60 }
 0x1d1   : > { %2991 = vst [vmem:[%s3770_s12 + $0x338] sm:$0xff] %v2735_v61  ;;  %v1118_v63 = vpop.f32.mrf.mxu0  ;;  %v1327_v0 = vpop.f32.mrf.mxu1 }
 0x1d2   : > { %1583 = vmatmul.f32.gmra.mxu2 %v937_v62  ;;  %1792 = vmatmul.f32.gmra.mxu3 %v937_v62  ;;  %v2736_v1 = vadd.f32 %v3766_v17, %v1118_v63  ;;  %v2737_v2 = vadd.f32 %v3766_v17, %v1327_v0 }
 0x1d4   : > { %2992 = vst [vmem:[%s3770_s12 + $0x340] sm:$0xff] %v2736_v1  ;;  %1165 = vmatmul.f32.gmra.mxu0 %v937_v62  ;;  %1374 = vmatmul.f32.gmra.mxu1 %v937_v62  ;;  %v944_v62 = vld [vmem:[%s4462_s0 + $0x188] sm:$0xff] }
 0x1d5   : > { %v1536_v3 = vpop.f32.mrf.mxu2  ;;  %v1745_v4 = vpop.f32.mrf.mxu3  ;;  %2993 = vst [vmem:[%s3770_s12 + $0x348] sm:$0xff] %v2737_v2 }
 0x1d6   : > { %v2738_v5 = vadd.f32 %v3766_v17, %v1536_v3  ;;  %v2739_v6 = vadd.f32 %v3766_v17, %v1745_v4 }
 0x1d8   : > { %2994 = vst [vmem:[%s3770_s12 + $0x350] sm:$0xff] %v2738_v5 }
 0x1d9   : > { %2995 = vst [vmem:[%s3770_s12 + $0x358] sm:$0xff] %v2739_v6  ;;  %v1121_v8 = vpop.f32.mrf.mxu0  ;;  %v1330_v9 = vpop.f32.mrf.mxu1 }
 0x1da   : > { %1586 = vmatmul.f32.gmra.mxu2 %v938_v7  ;;  %1795 = vmatmul.f32.gmra.mxu3 %v938_v7  ;;  %v2740_v10 = vadd.f32 %v3766_v17, %v1121_v8  ;;  %v2741_v11 = vadd.f32 %v3766_v17, %v1330_v9 }
 0x1dc   : > { %2996 = vst [vmem:[%s3770_s12 + $0x360] sm:$0xff] %v2740_v10  ;;  %1168 = vmatmul.f32.gmra.mxu0 %v938_v7  ;;  %1377 = vmatmul.f32.gmra.mxu1 %v938_v7  ;;  %v945_v7 = vld [vmem:[%s4462_s0 + $0x190] sm:$0xff] }
 0x1dd   : > { %v1539_v12 = vpop.f32.mrf.mxu2  ;;  %v1748_v13 = vpop.f32.mrf.mxu3  ;;  %2997 = vst [vmem:[%s3770_s12 + $0x368] sm:$0xff] %v2741_v11 }
 0x1de   : > { %v2742_v14 = vadd.f32 %v3766_v17, %v1539_v12  ;;  %v2743_v15 = vadd.f32 %v3766_v17, %v1748_v13 }
 0x1e0   : > { %2998 = vst [vmem:[%s3770_s12 + $0x370] sm:$0xff] %v2742_v14 }
 0x1e1   : > { %2999 = vst [vmem:[%s3770_s12 + $0x378] sm:$0xff] %v2743_v15  ;;  %v1124_v18 = vpop.f32.mrf.mxu0  ;;  %v1333_v19 = vpop.f32.mrf.mxu1 }
 0x1e2   : > { %1589 = vmatmul.f32.gmra.mxu2 %v939_v16  ;;  %1798 = vmatmul.f32.gmra.mxu3 %v939_v16  ;;  %v2744_v20 = vadd.f32 %v3766_v17, %v1124_v18  ;;  %v2745_v21 = vadd.f32 %v3766_v17, %v1333_v19 }
 0x1e4   : > { %3000 = vst [vmem:[%s3770_s12 + $0x380] sm:$0xff] %v2744_v20  ;;  %1171 = vmatmul.f32.gmra.mxu0 %v939_v16  ;;  %1380 = vmatmul.f32.gmra.mxu1 %v939_v16  ;;  %v946_v16 = vld [vmem:[%s4462_s0 + $0x198] sm:$0xff] }
 0x1e5   : > { %v1542_v22 = vpop.f32.mrf.mxu2  ;;  %v1751_v23 = vpop.f32.mrf.mxu3  ;;  %3001 = vst [vmem:[%s3770_s12 + $0x388] sm:$0xff] %v2745_v21 }
 0x1e6   : > { %v2746_v24 = vadd.f32 %v3766_v17, %v1542_v22  ;;  %v2747_v25 = vadd.f32 %v3766_v17, %v1751_v23 }
 0x1e8   : > { %3002 = vst [vmem:[%s3770_s12 + $0x390] sm:$0xff] %v2746_v24 }
 0x1e9   : > { %3003 = vst [vmem:[%s3770_s12 + $0x398] sm:$0xff] %v2747_v25  ;;  %v1127_v27 = vpop.f32.mrf.mxu0  ;;  %v1336_v28 = vpop.f32.mrf.mxu1 }
 0x1ea   : > { %1592 = vmatmul.f32.gmra.mxu2 %v940_v26  ;;  %1801 = vmatmul.f32.gmra.mxu3 %v940_v26  ;;  %v2748_v29 = vadd.f32 %v3766_v17, %v1127_v27  ;;  %v2749_v30 = vadd.f32 %v3766_v17, %v1336_v28 }
 0x1ec   : > { %3004 = vst [vmem:[%s3770_s12 + $0x3a0] sm:$0xff] %v2748_v29  ;;  %1174 = vmatmul.f32.gmra.mxu0 %v940_v26  ;;  %1383 = vmatmul.f32.gmra.mxu1 %v940_v26  ;;  %v947_v26 = vld [vmem:[%s4462_s0 + $0x1a0] sm:$0xff] }
 0x1ed   : > { %v1545_v31 = vpop.f32.mrf.mxu2  ;;  %v1754_v32 = vpop.f32.mrf.mxu3  ;;  %3005 = vst [vmem:[%s3770_s12 + $0x3a8] sm:$0xff] %v2749_v30 }
 0x1ee   : > { %v2750_v33 = vadd.f32 %v3766_v17, %v1545_v31  ;;  %v2751_v34 = vadd.f32 %v3766_v17, %v1754_v32 }
 0x1f0   : > { %3006 = vst [vmem:[%s3770_s12 + $0x3b0] sm:$0xff] %v2750_v33 }
 0x1f1   : > { %3007 = vst [vmem:[%s3770_s12 + $0x3b8] sm:$0xff] %v2751_v34  ;;  %v1130_v36 = vpop.f32.mrf.mxu0  ;;  %v1339_v37 = vpop.f32.mrf.mxu1 }
 0x1f2   : > { %1595 = vmatmul.f32.gmra.mxu2 %v941_v35  ;;  %1804 = vmatmul.f32.gmra.mxu3 %v941_v35  ;;  %v2752_v38 = vadd.f32 %v3766_v17, %v1130_v36  ;;  %v2753_v39 = vadd.f32 %v3766_v17, %v1339_v37 }
 0x1f4   : > { %3008 = vst [vmem:[%s3770_s12 + $0x3c0] sm:$0xff] %v2752_v38  ;;  %1177 = vmatmul.f32.gmra.mxu0 %v941_v35  ;;  %1386 = vmatmul.f32.gmra.mxu1 %v941_v35  ;;  %v948_v35 = vld [vmem:[%s4462_s0 + $0x1a8] sm:$0xff] }
 0x1f5   : > { %v1548_v40 = vpop.f32.mrf.mxu2  ;;  %v1757_v41 = vpop.f32.mrf.mxu3  ;;  %3009 = vst [vmem:[%s3770_s12 + $0x3c8] sm:$0xff] %v2753_v39 }
 0x1f6   : > { %v2754_v42 = vadd.f32 %v3766_v17, %v1548_v40  ;;  %v2755_v43 = vadd.f32 %v3766_v17, %v1757_v41 }
 0x1f8   : > { %3010 = vst [vmem:[%s3770_s12 + $0x3d0] sm:$0xff] %v2754_v42 }
 0x1f9   : > { %3011 = vst [vmem:[%s3770_s12 + $0x3d8] sm:$0xff] %v2755_v43  ;;  %v1133_v45 = vpop.f32.mrf.mxu0  ;;  %v1342_v46 = vpop.f32.mrf.mxu1 }
 0x1fa   : > { %1598 = vmatmul.f32.gmra.mxu2 %v942_v44  ;;  %1807 = vmatmul.f32.gmra.mxu3 %v942_v44  ;;  %v2756_v47 = vadd.f32 %v3766_v17, %v1133_v45  ;;  %v2757_v48 = vadd.f32 %v3766_v17, %v1342_v46 }
 0x1fc   : > { %3012 = vst [vmem:[%s3770_s12 + $0x3e0] sm:$0xff] %v2756_v47  ;;  %1180 = vmatmul.f32.gmra.mxu0 %v942_v44  ;;  %1389 = vmatmul.f32.gmra.mxu1 %v942_v44  ;;  %v949_v44 = vld [vmem:[%s4462_s0 + $0x1b0] sm:$0xff] }
 0x1fd   : > { %v1551_v49 = vpop.f32.mrf.mxu2  ;;  %v1760_v50 = vpop.f32.mrf.mxu3  ;;  %3013 = vst [vmem:[%s3770_s12 + $0x3e8] sm:$0xff] %v2757_v48 }
 0x1fe   : > { %v2758_v51 = vadd.f32 %v3766_v17, %v1551_v49  ;;  %v2759_v52 = vadd.f32 %v3766_v17, %v1760_v50 }
 0x200   : > { %3014 = vst [vmem:[%s3770_s12 + $0x3f0] sm:$0xff] %v2758_v51 }
 0x201   : > { %3015 = vst [vmem:[%s3770_s12 + $0x3f8] sm:$0xff] %v2759_v52  ;;  %v1136_v54 = vpop.f32.mrf.mxu0  ;;  %v1345_v55 = vpop.f32.mrf.mxu1 }
 0x202   : > { %1601 = vmatmul.f32.gmra.mxu2 %v943_v53  ;;  %1810 = vmatmul.f32.gmra.mxu3 %v943_v53  ;;  %v2760_v56 = vadd.f32 %v3766_v17, %v1136_v54  ;;  %v2761_v57 = vadd.f32 %v3766_v17, %v1345_v55 }
 0x204   : > { %3016 = vst [vmem:[%s3770_s12 + $0x400] sm:$0xff] %v2760_v56  ;;  %1183 = vmatmul.f32.gmra.mxu0 %v943_v53  ;;  %1392 = vmatmul.f32.gmra.mxu1 %v943_v53  ;;  %v950_v53 = vld [vmem:[%s4462_s0 + $0x1b8] sm:$0xff] }
 0x205   : > { %v1554_v58 = vpop.f32.mrf.mxu2  ;;  %v1763_v59 = vpop.f32.mrf.mxu3  ;;  %3017 = vst [vmem:[%s3770_s12 + $0x408] sm:$0xff] %v2761_v57 }
 0x206   : > { %v2762_v60 = vadd.f32 %v3766_v17, %v1554_v58  ;;  %v2763_v61 = vadd.f32 %v3766_v17, %v1763_v59 }
 0x208   : > { %3018 = vst [vmem:[%s3770_s12 + $0x410] sm:$0xff] %v2762_v60 }
 0x209   : > { %3019 = vst [vmem:[%s3770_s12 + $0x418] sm:$0xff] %v2763_v61  ;;  %v1139_v63 = vpop.f32.mrf.mxu0  ;;  %v1348_v0 = vpop.f32.mrf.mxu1 }
 0x20a   : > { %1604 = vmatmul.f32.gmra.mxu2 %v944_v62  ;;  %1813 = vmatmul.f32.gmra.mxu3 %v944_v62  ;;  %v2764_v1 = vadd.f32 %v3766_v17, %v1139_v63  ;;  %v2765_v2 = vadd.f32 %v3766_v17, %v1348_v0 }
 0x20c   : > { %3020 = vst [vmem:[%s3770_s12 + $0x420] sm:$0xff] %v2764_v1  ;;  %1186 = vmatmul.f32.gmra.mxu0 %v944_v62  ;;  %1395 = vmatmul.f32.gmra.mxu1 %v944_v62  ;;  %v951_v62 = vld [vmem:[%s4462_s0 + $0x1c0] sm:$0xff] }
 0x20d   : > { %v1557_v3 = vpop.f32.mrf.mxu2  ;;  %v1766_v4 = vpop.f32.mrf.mxu3  ;;  %3021 = vst [vmem:[%s3770_s12 + $0x428] sm:$0xff] %v2765_v2 }
 0x20e   : > { %v2766_v5 = vadd.f32 %v3766_v17, %v1557_v3  ;;  %v2767_v6 = vadd.f32 %v3766_v17, %v1766_v4 }
 0x210   : > { %3022 = vst [vmem:[%s3770_s12 + $0x430] sm:$0xff] %v2766_v5 }
 0x211   : > { %3023 = vst [vmem:[%s3770_s12 + $0x438] sm:$0xff] %v2767_v6  ;;  %v1142_v8 = vpop.f32.mrf.mxu0  ;;  %v1351_v9 = vpop.f32.mrf.mxu1 }
 0x212   : > { %1607 = vmatmul.f32.gmra.mxu2 %v945_v7  ;;  %1816 = vmatmul.f32.gmra.mxu3 %v945_v7  ;;  %v2768_v10 = vadd.f32 %v3766_v17, %v1142_v8  ;;  %v2769_v11 = vadd.f32 %v3766_v17, %v1351_v9 }
 0x214   : > { %3024 = vst [vmem:[%s3770_s12 + $0x440] sm:$0xff] %v2768_v10  ;;  %1189 = vmatmul.f32.gmra.mxu0 %v945_v7  ;;  %1398 = vmatmul.f32.gmra.mxu1 %v945_v7  ;;  %v952_v7 = vld [vmem:[%s4462_s0 + $0x1c8] sm:$0xff] }
 0x215   : > { %v1560_v12 = vpop.f32.mrf.mxu2  ;;  %v1769_v13 = vpop.f32.mrf.mxu3  ;;  %3025 = vst [vmem:[%s3770_s12 + $0x448] sm:$0xff] %v2769_v11 }
 0x216   : > { %v2770_v14 = vadd.f32 %v3766_v17, %v1560_v12  ;;  %v2771_v15 = vadd.f32 %v3766_v17, %v1769_v13 }
 0x218   : > { %3026 = vst [vmem:[%s3770_s12 + $0x450] sm:$0xff] %v2770_v14 }
 0x219   : > { %3027 = vst [vmem:[%s3770_s12 + $0x458] sm:$0xff] %v2771_v15  ;;  %v1145_v18 = vpop.f32.mrf.mxu0  ;;  %v1354_v19 = vpop.f32.mrf.mxu1 }
 0x21a   : > { %1610 = vmatmul.f32.gmra.mxu2 %v946_v16  ;;  %1819 = vmatmul.f32.gmra.mxu3 %v946_v16  ;;  %v2772_v20 = vadd.f32 %v3766_v17, %v1145_v18  ;;  %v2773_v21 = vadd.f32 %v3766_v17, %v1354_v19 }
 0x21c   : > { %3028 = vst [vmem:[%s3770_s12 + $0x460] sm:$0xff] %v2772_v20  ;;  %1192 = vmatmul.f32.gmra.mxu0 %v946_v16  ;;  %1401 = vmatmul.f32.gmra.mxu1 %v946_v16  ;;  %v953_v16 = vld [vmem:[%s4462_s0 + $0x1d0] sm:$0xff] }
 0x21d   : > { %v1563_v22 = vpop.f32.mrf.mxu2  ;;  %v1772_v23 = vpop.f32.mrf.mxu3  ;;  %3029 = vst [vmem:[%s3770_s12 + $0x468] sm:$0xff] %v2773_v21 }
 0x21e   : > { %v2774_v24 = vadd.f32 %v3766_v17, %v1563_v22  ;;  %v2775_v25 = vadd.f32 %v3766_v17, %v1772_v23 }
 0x220   : > { %3030 = vst [vmem:[%s3770_s12 + $0x470] sm:$0xff] %v2774_v24 }
 0x221   : > { %3031 = vst [vmem:[%s3770_s12 + $0x478] sm:$0xff] %v2775_v25  ;;  %v1148_v27 = vpop.f32.mrf.mxu0  ;;  %v1357_v28 = vpop.f32.mrf.mxu1 }
 0x222   : > { %1613 = vmatmul.f32.gmra.mxu2 %v947_v26  ;;  %1822 = vmatmul.f32.gmra.mxu3 %v947_v26  ;;  %v2776_v29 = vadd.f32 %v3766_v17, %v1148_v27  ;;  %v2777_v30 = vadd.f32 %v3766_v17, %v1357_v28 }
 0x224   : > { %3032 = vst [vmem:[%s3770_s12 + $0x480] sm:$0xff] %v2776_v29  ;;  %1195 = vmatmul.f32.gmra.mxu0 %v947_v26  ;;  %1404 = vmatmul.f32.gmra.mxu1 %v947_v26  ;;  %v954_v26 = vld [vmem:[%s4462_s0 + $0x1d8] sm:$0xff] }
 0x225   : > { %v1566_v31 = vpop.f32.mrf.mxu2  ;;  %v1775_v32 = vpop.f32.mrf.mxu3  ;;  %3033 = vst [vmem:[%s3770_s12 + $0x488] sm:$0xff] %v2777_v30 }
 0x226   : > { %v2778_v33 = vadd.f32 %v3766_v17, %v1566_v31  ;;  %v2779_v34 = vadd.f32 %v3766_v17, %v1775_v32 }
 0x228   : > { %3034 = vst [vmem:[%s3770_s12 + $0x490] sm:$0xff] %v2778_v33 }
 0x229   : > { %3035 = vst [vmem:[%s3770_s12 + $0x498] sm:$0xff] %v2779_v34  ;;  %v1151_v36 = vpop.f32.mrf.mxu0  ;;  %v1360_v37 = vpop.f32.mrf.mxu1 }
 0x22a   : > { %1616 = vmatmul.f32.gmra.mxu2 %v948_v35  ;;  %1825 = vmatmul.f32.gmra.mxu3 %v948_v35  ;;  %v2780_v38 = vadd.f32 %v3766_v17, %v1151_v36  ;;  %v2781_v39 = vadd.f32 %v3766_v17, %v1360_v37 }
 0x22c   : > { %3036 = vst [vmem:[%s3770_s12 + $0x4a0] sm:$0xff] %v2780_v38  ;;  %1198 = vmatmul.f32.gmra.mxu0 %v948_v35  ;;  %1407 = vmatmul.f32.gmra.mxu1 %v948_v35  ;;  %v955_v35 = vld [vmem:[%s4462_s0 + $0x1e0] sm:$0xff] }
 0x22d   : > { %v1569_v40 = vpop.f32.mrf.mxu2  ;;  %v1778_v41 = vpop.f32.mrf.mxu3  ;;  %3037 = vst [vmem:[%s3770_s12 + $0x4a8] sm:$0xff] %v2781_v39 }
 0x22e   : > { %v2782_v42 = vadd.f32 %v3766_v17, %v1569_v40  ;;  %v2783_v43 = vadd.f32 %v3766_v17, %v1778_v41 }
 0x230   : > { %3038 = vst [vmem:[%s3770_s12 + $0x4b0] sm:$0xff] %v2782_v42 }
 0x231   : > { %3039 = vst [vmem:[%s3770_s12 + $0x4b8] sm:$0xff] %v2783_v43  ;;  %v1154_v45 = vpop.f32.mrf.mxu0  ;;  %v1363_v46 = vpop.f32.mrf.mxu1 }
 0x232   : > { %1619 = vmatmul.f32.gmra.mxu2 %v949_v44  ;;  %1828 = vmatmul.f32.gmra.mxu3 %v949_v44  ;;  %v2784_v47 = vadd.f32 %v3766_v17, %v1154_v45  ;;  %v2785_v48 = vadd.f32 %v3766_v17, %v1363_v46 }
 0x234   : > { %3040 = vst [vmem:[%s3770_s12 + $0x4c0] sm:$0xff] %v2784_v47  ;;  %1201 = vmatmul.f32.gmra.mxu0 %v949_v44  ;;  %1410 = vmatmul.f32.gmra.mxu1 %v949_v44  ;;  %v956_v44 = vld [vmem:[%s4462_s0 + $0x1e8] sm:$0xff] }
 0x235   : > { %v1572_v49 = vpop.f32.mrf.mxu2  ;;  %v1781_v50 = vpop.f32.mrf.mxu3  ;;  %3041 = vst [vmem:[%s3770_s12 + $0x4c8] sm:$0xff] %v2785_v48 }
 0x236   : > { %v2786_v51 = vadd.f32 %v3766_v17, %v1572_v49  ;;  %v2787_v52 = vadd.f32 %v3766_v17, %v1781_v50 }
 0x238   : > { %3042 = vst [vmem:[%s3770_s12 + $0x4d0] sm:$0xff] %v2786_v51 }
 0x239   : > { %3043 = vst [vmem:[%s3770_s12 + $0x4d8] sm:$0xff] %v2787_v52  ;;  %v1157_v54 = vpop.f32.mrf.mxu0  ;;  %v1366_v55 = vpop.f32.mrf.mxu1 }
 0x23a   : > { %1622 = vmatmul.f32.gmra.mxu2 %v950_v53  ;;  %1831 = vmatmul.f32.gmra.mxu3 %v950_v53  ;;  %v2788_v56 = vadd.f32 %v3766_v17, %v1157_v54  ;;  %v2789_v57 = vadd.f32 %v3766_v17, %v1366_v55 }
 0x23c   : > { %3044 = vst [vmem:[%s3770_s12 + $0x4e0] sm:$0xff] %v2788_v56  ;;  %1204 = vmatmul.f32.gmra.mxu0 %v950_v53  ;;  %1413 = vmatmul.f32.gmra.mxu1 %v950_v53  ;;  %v957_v53 = vld [vmem:[%s4462_s0 + $0x1f0] sm:$0xff] }
 0x23d   : > { %v1575_v58 = vpop.f32.mrf.mxu2  ;;  %v1784_v59 = vpop.f32.mrf.mxu3  ;;  %3045 = vst [vmem:[%s3770_s12 + $0x4e8] sm:$0xff] %v2789_v57 }
 0x23e   : > { %v2790_v60 = vadd.f32 %v3766_v17, %v1575_v58  ;;  %v2791_v61 = vadd.f32 %v3766_v17, %v1784_v59 }
 0x240   : > { %3046 = vst [vmem:[%s3770_s12 + $0x4f0] sm:$0xff] %v2790_v60 }
 0x241   : > { %3047 = vst [vmem:[%s3770_s12 + $0x4f8] sm:$0xff] %v2791_v61  ;;  %v1160_v63 = vpop.f32.mrf.mxu0  ;;  %v1369_v0 = vpop.f32.mrf.mxu1 }
 0x242   : > { %1625 = vmatmul.f32.gmra.mxu2 %v951_v62  ;;  %1834 = vmatmul.f32.gmra.mxu3 %v951_v62  ;;  %v2792_v1 = vadd.f32 %v3766_v17, %v1160_v63  ;;  %v2793_v2 = vadd.f32 %v3766_v17, %v1369_v0 }
 0x244   : > { %3048 = vst [vmem:[%s3770_s12 + $0x500] sm:$0xff] %v2792_v1  ;;  %1207 = vmatmul.f32.gmra.mxu0 %v951_v62  ;;  %1416 = vmatmul.f32.gmra.mxu1 %v951_v62  ;;  %v958_v62 = vld [vmem:[%s4462_s0 + $0x1f8] sm:$0xff] }
 0x245   : > { %v1578_v3 = vpop.f32.mrf.mxu2  ;;  %v1787_v4 = vpop.f32.mrf.mxu3  ;;  %3049 = vst [vmem:[%s3770_s12 + $0x508] sm:$0xff] %v2793_v2 }
 0x246   : > { %v2794_v5 = vadd.f32 %v3766_v17, %v1578_v3  ;;  %v2795_v6 = vadd.f32 %v3766_v17, %v1787_v4 }
 0x248   : > { %3050 = vst [vmem:[%s3770_s12 + $0x510] sm:$0xff] %v2794_v5 }
 0x249   : > { %3051 = vst [vmem:[%s3770_s12 + $0x518] sm:$0xff] %v2795_v6  ;;  %v1163_v8 = vpop.f32.mrf.mxu0  ;;  %v1372_v9 = vpop.f32.mrf.mxu1 }
 0x24a   : > { %1628 = vmatmul.f32.gmra.mxu2 %v952_v7  ;;  %1837 = vmatmul.f32.gmra.mxu3 %v952_v7  ;;  %v2796_v10 = vadd.f32 %v3766_v17, %v1163_v8  ;;  %v2797_v11 = vadd.f32 %v3766_v17, %v1372_v9 }
 0x24c   : > { %3052 = vst [vmem:[%s3770_s12 + $0x520] sm:$0xff] %v2796_v10  ;;  %1210 = vmatmul.f32.gmra.mxu0 %v952_v7  ;;  %1419 = vmatmul.f32.gmra.mxu1 %v952_v7 }
 0x24d   : > { %v1581_v12 = vpop.f32.mrf.mxu2  ;;  %v1790_v13 = vpop.f32.mrf.mxu3  ;;  %3053 = vst [vmem:[%s3770_s12 + $0x528] sm:$0xff] %v2797_v11 }
 0x24e   : > { %v2798_v14 = vadd.f32 %v3766_v17, %v1581_v12  ;;  %v2799_v15 = vadd.f32 %v3766_v17, %v1790_v13 }
 0x250   : > { %3054 = vst [vmem:[%s3770_s12 + $0x530] sm:$0xff] %v2798_v14 }
 0x251   : > { %3055 = vst [vmem:[%s3770_s12 + $0x538] sm:$0xff] %v2799_v15  ;;  %v1166_v18 = vpop.f32.mrf.mxu0  ;;  %v1375_v19 = vpop.f32.mrf.mxu1 }
 0x252   : > { %1631 = vmatmul.f32.gmra.mxu2 %v953_v16  ;;  %1840 = vmatmul.f32.gmra.mxu3 %v953_v16  ;;  %v2800_v20 = vadd.f32 %v3766_v17, %v1166_v18  ;;  %v2801_v21 = vadd.f32 %v3766_v17, %v1375_v19 }
 0x254   : > { %3056 = vst [vmem:[%s3770_s12 + $0x540] sm:$0xff] %v2800_v20  ;;  %1213 = vmatmul.f32.gmra.mxu0 %v953_v16  ;;  %1422 = vmatmul.f32.gmra.mxu1 %v953_v16 }
 0x255   : > { %v1584_v22 = vpop.f32.mrf.mxu2  ;;  %v1793_v23 = vpop.f32.mrf.mxu3  ;;  %3057 = vst [vmem:[%s3770_s12 + $0x548] sm:$0xff] %v2801_v21 }
 0x256   : > { %v2802_v24 = vadd.f32 %v3766_v17, %v1584_v22  ;;  %v2803_v25 = vadd.f32 %v3766_v17, %v1793_v23 }
 0x258   : > { %3058 = vst [vmem:[%s3770_s12 + $0x550] sm:$0xff] %v2802_v24 }
 0x259   : > { %3059 = vst [vmem:[%s3770_s12 + $0x558] sm:$0xff] %v2803_v25  ;;  %v1169_v27 = vpop.f32.mrf.mxu0  ;;  %v1378_v28 = vpop.f32.mrf.mxu1 }
 0x25a   : > { %1634 = vmatmul.f32.gmra.mxu2 %v954_v26  ;;  %1843 = vmatmul.f32.gmra.mxu3 %v954_v26  ;;  %v2804_v29 = vadd.f32 %v3766_v17, %v1169_v27  ;;  %v2805_v30 = vadd.f32 %v3766_v17, %v1378_v28 }
 0x25c   : > { %3060 = vst [vmem:[%s3770_s12 + $0x560] sm:$0xff] %v2804_v29  ;;  %1216 = vmatmul.f32.gmra.mxu0 %v954_v26  ;;  %1425 = vmatmul.f32.gmra.mxu1 %v954_v26 }
 0x25d   : > { %v1587_v31 = vpop.f32.mrf.mxu2  ;;  %v1796_v32 = vpop.f32.mrf.mxu3  ;;  %3061 = vst [vmem:[%s3770_s12 + $0x568] sm:$0xff] %v2805_v30 }
 0x25e   : > { %v2806_v33 = vadd.f32 %v3766_v17, %v1587_v31  ;;  %v2807_v34 = vadd.f32 %v3766_v17, %v1796_v32 }
 0x260   : > { %3062 = vst [vmem:[%s3770_s12 + $0x570] sm:$0xff] %v2806_v33 }
 0x261   : > { %3063 = vst [vmem:[%s3770_s12 + $0x578] sm:$0xff] %v2807_v34  ;;  %v1172_v36 = vpop.f32.mrf.mxu0  ;;  %v1381_v37 = vpop.f32.mrf.mxu1 }
 0x262   : > { %1637 = vmatmul.f32.gmra.mxu2 %v955_v35  ;;  %1846 = vmatmul.f32.gmra.mxu3 %v955_v35  ;;  %v2808_v38 = vadd.f32 %v3766_v17, %v1172_v36  ;;  %v2809_v39 = vadd.f32 %v3766_v17, %v1381_v37 }
 0x264   : > { %3064 = vst [vmem:[%s3770_s12 + $0x580] sm:$0xff] %v2808_v38  ;;  %1219 = vmatmul.f32.gmra.mxu0 %v955_v35  ;;  %1428 = vmatmul.f32.gmra.mxu1 %v955_v35 }
 0x265   : > { %v1590_v40 = vpop.f32.mrf.mxu2  ;;  %v1799_v41 = vpop.f32.mrf.mxu3  ;;  %3065 = vst [vmem:[%s3770_s12 + $0x588] sm:$0xff] %v2809_v39 }
 0x266   : > { %v2810_v42 = vadd.f32 %v3766_v17, %v1590_v40  ;;  %v2811_v43 = vadd.f32 %v3766_v17, %v1799_v41 }
 0x268   : > { %3066 = vst [vmem:[%s3770_s12 + $0x590] sm:$0xff] %v2810_v42 }
 0x269   : > { %3067 = vst [vmem:[%s3770_s12 + $0x598] sm:$0xff] %v2811_v43  ;;  %v1175_v45 = vpop.f32.mrf.mxu0  ;;  %v1384_v46 = vpop.f32.mrf.mxu1 }
 0x26a   : > { %1640 = vmatmul.f32.gmra.mxu2 %v956_v44  ;;  %1849 = vmatmul.f32.gmra.mxu3 %v956_v44  ;;  %v2812_v47 = vadd.f32 %v3766_v17, %v1175_v45  ;;  %v2813_v48 = vadd.f32 %v3766_v17, %v1384_v46 }
 0x26c   : > { %3068 = vst [vmem:[%s3770_s12 + $0x5a0] sm:$0xff] %v2812_v47  ;;  %1222 = vmatmul.f32.gmra.mxu0 %v956_v44  ;;  %1431 = vmatmul.f32.gmra.mxu1 %v956_v44 }
 0x26d   : > { %v1593_v49 = vpop.f32.mrf.mxu2  ;;  %v1802_v50 = vpop.f32.mrf.mxu3  ;;  %3069 = vst [vmem:[%s3770_s12 + $0x5a8] sm:$0xff] %v2813_v48 }
 0x26e   : > { %v2814_v51 = vadd.f32 %v3766_v17, %v1593_v49  ;;  %v2815_v52 = vadd.f32 %v3766_v17, %v1802_v50 }
 0x270   : > { %3070 = vst [vmem:[%s3770_s12 + $0x5b0] sm:$0xff] %v2814_v51 }
 0x271   : > { %3071 = vst [vmem:[%s3770_s12 + $0x5b8] sm:$0xff] %v2815_v52  ;;  %v1178_v54 = vpop.f32.mrf.mxu0  ;;  %v1387_v55 = vpop.f32.mrf.mxu1 }
 0x272   : > { %1643 = vmatmul.f32.gmra.mxu2 %v957_v53  ;;  %1852 = vmatmul.f32.gmra.mxu3 %v957_v53  ;;  %v2816_v56 = vadd.f32 %v3766_v17, %v1178_v54  ;;  %v2817_v57 = vadd.f32 %v3766_v17, %v1387_v55 }
 0x274   : > { %3072 = vst [vmem:[%s3770_s12 + $0x5c0] sm:$0xff] %v2816_v56  ;;  %1225 = vmatmul.f32.gmra.mxu0 %v957_v53  ;;  %1434 = vmatmul.f32.gmra.mxu1 %v957_v53 }
 0x275   : > { %v1596_v58 = vpop.f32.mrf.mxu2  ;;  %v1805_v59 = vpop.f32.mrf.mxu3  ;;  %3073 = vst [vmem:[%s3770_s12 + $0x5c8] sm:$0xff] %v2817_v57 }
 0x276   : > { %v2818_v60 = vadd.f32 %v3766_v17, %v1596_v58  ;;  %v2819_v61 = vadd.f32 %v3766_v17, %v1805_v59 }
 0x278   : > { %3074 = vst [vmem:[%s3770_s12 + $0x5d0] sm:$0xff] %v2818_v60 }
 0x279   : > { %3075 = vst [vmem:[%s3770_s12 + $0x5d8] sm:$0xff] %v2819_v61  ;;  %v1181_v63 = vpop.f32.mrf.mxu0  ;;  %v1390_v0 = vpop.f32.mrf.mxu1 }
 0x27a   : > { %1646 = vmatmul.f32.gmra.mxu2 %v958_v62  ;;  %1855 = vmatmul.f32.gmra.mxu3 %v958_v62  ;;  %v2820_v1 = vadd.f32 %v3766_v17, %v1181_v63  ;;  %v2821_v2 = vadd.f32 %v3766_v17, %v1390_v0 }
 0x27c   : > { %3076 = vst [vmem:[%s3770_s12 + $0x5e0] sm:$0xff] %v2820_v1  ;;  %1228 = vmatmul.f32.gmra.mxu0 %v958_v62  ;;  %1437 = vmatmul.f32.gmra.mxu1 %v958_v62 }
 0x27d   : > { %v1599_v3 = vpop.f32.mrf.mxu2  ;;  %v1808_v4 = vpop.f32.mrf.mxu3  ;;  %3077 = vst [vmem:[%s3770_s12 + $0x5e8] sm:$0xff] %v2821_v2 }
 0x27e   : > { %v2822_v5 = vadd.f32 %v3766_v17, %v1599_v3  ;;  %v2823_v6 = vadd.f32 %v3766_v17, %v1808_v4 }
 0x280   : > { %3078 = vst [vmem:[%s3770_s12 + $0x5f0] sm:$0xff] %v2822_v5 }
 0x281   : > { %3079 = vst [vmem:[%s3770_s12 + $0x5f8] sm:$0xff] %v2823_v6  ;;  %v1184_v7 = vpop.f32.mrf.mxu0  ;;  %v1393_v8 = vpop.f32.mrf.mxu1 }
 0x282   : > { %v2824_v9 = vadd.f32 %v3766_v17, %v1184_v7  ;;  %v2825_v10 = vadd.f32 %v3766_v17, %v1393_v8 }
 0x284   : > { %3080 = vst [vmem:[%s3770_s12 + $0x600] sm:$0xff] %v2824_v9 }
 0x285   : > { %v1602_v11 = vpop.f32.mrf.mxu2  ;;  %v1811_v12 = vpop.f32.mrf.mxu3  ;;  %3081 = vst [vmem:[%s3770_s12 + $0x608] sm:$0xff] %v2825_v10 }
 0x286   : > { %v2826_v13 = vadd.f32 %v3766_v17, %v1602_v11  ;;  %v2827_v14 = vadd.f32 %v3766_v17, %v1811_v12 }
 0x288   : > { %3082 = vst [vmem:[%s3770_s12 + $0x610] sm:$0xff] %v2826_v13 }
 0x289   : > { %3083 = vst [vmem:[%s3770_s12 + $0x618] sm:$0xff] %v2827_v14  ;;  %v1187_v15 = vpop.f32.mrf.mxu0  ;;  %v1396_v16 = vpop.f32.mrf.mxu1 }
 0x28a   : > { %v2828_v18 = vadd.f32 %v3766_v17, %v1187_v15  ;;  %v2829_v19 = vadd.f32 %v3766_v17, %v1396_v16 }
 0x28c   : > { %3084 = vst [vmem:[%s3770_s12 + $0x620] sm:$0xff] %v2828_v18 }
 0x28d   : > { %v1605_v20 = vpop.f32.mrf.mxu2  ;;  %v1814_v21 = vpop.f32.mrf.mxu3  ;;  %3085 = vst [vmem:[%s3770_s12 + $0x628] sm:$0xff] %v2829_v19 }
 0x28e   : > { %v2830_v22 = vadd.f32 %v3766_v17, %v1605_v20  ;;  %v2831_v23 = vadd.f32 %v3766_v17, %v1814_v21 }
 0x290   : > { %3086 = vst [vmem:[%s3770_s12 + $0x630] sm:$0xff] %v2830_v22 }
 0x291   : > { %3087 = vst [vmem:[%s3770_s12 + $0x638] sm:$0xff] %v2831_v23  ;;  %v1190_v24 = vpop.f32.mrf.mxu0  ;;  %v1399_v25 = vpop.f32.mrf.mxu1 }
 0x292   : > { %v2832_v26 = vadd.f32 %v3766_v17, %v1190_v24  ;;  %v2833_v27 = vadd.f32 %v3766_v17, %v1399_v25 }
 0x294   : > { %3088 = vst [vmem:[%s3770_s12 + $0x640] sm:$0xff] %v2832_v26 }
 0x295   : > { %v1608_v28 = vpop.f32.mrf.mxu2  ;;  %v1817_v29 = vpop.f32.mrf.mxu3  ;;  %3089 = vst [vmem:[%s3770_s12 + $0x648] sm:$0xff] %v2833_v27 }
 0x296   : > { %v2834_v30 = vadd.f32 %v3766_v17, %v1608_v28  ;;  %v2835_v31 = vadd.f32 %v3766_v17, %v1817_v29 }
 0x298   : > { %3090 = vst [vmem:[%s3770_s12 + $0x650] sm:$0xff] %v2834_v30 }
 0x299   : > { %3091 = vst [vmem:[%s3770_s12 + $0x658] sm:$0xff] %v2835_v31  ;;  %v1193_v32 = vpop.f32.mrf.mxu0  ;;  %v1402_v33 = vpop.f32.mrf.mxu1 }
 0x29a   : > { %v2836_v34 = vadd.f32 %v3766_v17, %v1193_v32  ;;  %v2837_v35 = vadd.f32 %v3766_v17, %v1402_v33 }
 0x29c   : > { %3092 = vst [vmem:[%s3770_s12 + $0x660] sm:$0xff] %v2836_v34 }
 0x29d   : > { %v1611_v36 = vpop.f32.mrf.mxu2  ;;  %v1820_v37 = vpop.f32.mrf.mxu3  ;;  %3093 = vst [vmem:[%s3770_s12 + $0x668] sm:$0xff] %v2837_v35 }
 0x29e   : > { %v2838_v38 = vadd.f32 %v3766_v17, %v1611_v36  ;;  %v2839_v39 = vadd.f32 %v3766_v17, %v1820_v37 }
 0x2a0   : > { %3094 = vst [vmem:[%s3770_s12 + $0x670] sm:$0xff] %v2838_v38 }
 0x2a1   : > { %3095 = vst [vmem:[%s3770_s12 + $0x678] sm:$0xff] %v2839_v39  ;;  %v1196_v40 = vpop.f32.mrf.mxu0  ;;  %v1405_v41 = vpop.f32.mrf.mxu1 }
 0x2a2   : > { %v2840_v42 = vadd.f32 %v3766_v17, %v1196_v40  ;;  %v2841_v43 = vadd.f32 %v3766_v17, %v1405_v41 }
 0x2a4   : > { %3096 = vst [vmem:[%s3770_s12 + $0x680] sm:$0xff] %v2840_v42 }
 0x2a5   : > { %v1614_v44 = vpop.f32.mrf.mxu2  ;;  %v1823_v45 = vpop.f32.mrf.mxu3  ;;  %3097 = vst [vmem:[%s3770_s12 + $0x688] sm:$0xff] %v2841_v43 }
 0x2a6   : > { %v2842_v46 = vadd.f32 %v3766_v17, %v1614_v44  ;;  %v2843_v47 = vadd.f32 %v3766_v17, %v1823_v45 }
 0x2a8   : > { %3098 = vst [vmem:[%s3770_s12 + $0x690] sm:$0xff] %v2842_v46 }
 0x2a9   : > { %3099 = vst [vmem:[%s3770_s12 + $0x698] sm:$0xff] %v2843_v47  ;;  %v1199_v48 = vpop.f32.mrf.mxu0  ;;  %v1408_v49 = vpop.f32.mrf.mxu1 }
 0x2aa   : > { %v2844_v50 = vadd.f32 %v3766_v17, %v1199_v48  ;;  %v2845_v51 = vadd.f32 %v3766_v17, %v1408_v49 }
 0x2ac   : > { %3100 = vst [vmem:[%s3770_s12 + $0x6a0] sm:$0xff] %v2844_v50 }
 0x2ad   : > { %v1617_v52 = vpop.f32.mrf.mxu2  ;;  %v1826_v53 = vpop.f32.mrf.mxu3  ;;  %3101 = vst [vmem:[%s3770_s12 + $0x6a8] sm:$0xff] %v2845_v51 }
 0x2ae   : > { %v2846_v54 = vadd.f32 %v3766_v17, %v1617_v52  ;;  %v2847_v55 = vadd.f32 %v3766_v17, %v1826_v53 }
 0x2b0   : > { %3102 = vst [vmem:[%s3770_s12 + $0x6b0] sm:$0xff] %v2846_v54 }
 0x2b1   : > { %3103 = vst [vmem:[%s3770_s12 + $0x6b8] sm:$0xff] %v2847_v55  ;;  %v1202_v56 = vpop.f32.mrf.mxu0  ;;  %v1411_v57 = vpop.f32.mrf.mxu1 }
 0x2b2   : > { %v2848_v58 = vadd.f32 %v3766_v17, %v1202_v56  ;;  %v2849_v59 = vadd.f32 %v3766_v17, %v1411_v57 }
 0x2b4   : > { %3104 = vst [vmem:[%s3770_s12 + $0x6c0] sm:$0xff] %v2848_v58 }
 0x2b5   : > { %v1620_v60 = vpop.f32.mrf.mxu2  ;;  %v1829_v61 = vpop.f32.mrf.mxu3  ;;  %3105 = vst [vmem:[%s3770_s12 + $0x6c8] sm:$0xff] %v2849_v59 }
 0x2b6   : > { %v2850_v62 = vadd.f32 %v3766_v17, %v1620_v60  ;;  %v2851_v63 = vadd.f32 %v3766_v17, %v1829_v61 }
 0x2b8   : > { %3106 = vst [vmem:[%s3770_s12 + $0x6d0] sm:$0xff] %v2850_v62 }
 0x2b9   : > { %3107 = vst [vmem:[%s3770_s12 + $0x6d8] sm:$0xff] %v2851_v63  ;;  %v1205_v0 = vpop.f32.mrf.mxu0  ;;  %v1414_v1 = vpop.f32.mrf.mxu1 }
 0x2ba   : > { %v2852_v2 = vadd.f32 %v3766_v17, %v1205_v0  ;;  %v2853_v3 = vadd.f32 %v3766_v17, %v1414_v1 }
 0x2bc   : > { %3108 = vst [vmem:[%s3770_s12 + $0x6e0] sm:$0xff] %v2852_v2 }
 0x2bd   : > { %v1623_v4 = vpop.f32.mrf.mxu2  ;;  %v1832_v5 = vpop.f32.mrf.mxu3  ;;  %3109 = vst [vmem:[%s3770_s12 + $0x6e8] sm:$0xff] %v2853_v3 }
 0x2be   : > { %v2854_v6 = vadd.f32 %v3766_v17, %v1623_v4  ;;  %v2855_v7 = vadd.f32 %v3766_v17, %v1832_v5 }
 0x2c0   : > { %3110 = vst [vmem:[%s3770_s12 + $0x6f0] sm:$0xff] %v2854_v6 }
 0x2c1   : > { %3111 = vst [vmem:[%s3770_s12 + $0x6f8] sm:$0xff] %v2855_v7  ;;  %v1208_v8 = vpop.f32.mrf.mxu0  ;;  %v1417_v9 = vpop.f32.mrf.mxu1 }
 0x2c2   : > { %v2856_v10 = vadd.f32 %v3766_v17, %v1208_v8  ;;  %v2857_v11 = vadd.f32 %v3766_v17, %v1417_v9 }
 0x2c4   : > { %3112 = vst [vmem:[%s3770_s12 + $0x700] sm:$0xff] %v2856_v10 }
 0x2c5   : > { %v1626_v12 = vpop.f32.mrf.mxu2  ;;  %v1835_v13 = vpop.f32.mrf.mxu3  ;;  %3113 = vst [vmem:[%s3770_s12 + $0x708] sm:$0xff] %v2857_v11 }
 0x2c6   : > { %v2858_v14 = vadd.f32 %v3766_v17, %v1626_v12  ;;  %v2859_v15 = vadd.f32 %v3766_v17, %v1835_v13 }
 0x2c8   : > { %3114 = vst [vmem:[%s3770_s12 + $0x710] sm:$0xff] %v2858_v14 }
 0x2c9   : > { %3115 = vst [vmem:[%s3770_s12 + $0x718] sm:$0xff] %v2859_v15  ;;  %v1211_v16 = vpop.f32.mrf.mxu0  ;;  %v1420_v18 = vpop.f32.mrf.mxu1 }
 0x2ca   : > { %v2860_v19 = vadd.f32 %v3766_v17, %v1211_v16  ;;  %v2861_v20 = vadd.f32 %v3766_v17, %v1420_v18 }
 0x2cc   : > { %3116 = vst [vmem:[%s3770_s12 + $0x720] sm:$0xff] %v2860_v19 }
 0x2cd   : > { %v1629_v21 = vpop.f32.mrf.mxu2  ;;  %v1838_v22 = vpop.f32.mrf.mxu3  ;;  %3117 = vst [vmem:[%s3770_s12 + $0x728] sm:$0xff] %v2861_v20 }
 0x2ce   : > { %v2862_v23 = vadd.f32 %v3766_v17, %v1629_v21  ;;  %v2863_v24 = vadd.f32 %v3766_v17, %v1838_v22 }
 0x2d0   : > { %3118 = vst [vmem:[%s3770_s12 + $0x730] sm:$0xff] %v2862_v23 }
 0x2d1   : > { %3119 = vst [vmem:[%s3770_s12 + $0x738] sm:$0xff] %v2863_v24  ;;  %v1214_v25 = vpop.f32.mrf.mxu0  ;;  %v1423_v26 = vpop.f32.mrf.mxu1 }
 0x2d2   : > { %v2864_v27 = vadd.f32 %v3766_v17, %v1214_v25  ;;  %v2865_v28 = vadd.f32 %v3766_v17, %v1423_v26 }
 0x2d4   : > { %3120 = vst [vmem:[%s3770_s12 + $0x740] sm:$0xff] %v2864_v27 }
 0x2d5   : > { %v1632_v29 = vpop.f32.mrf.mxu2  ;;  %v1841_v30 = vpop.f32.mrf.mxu3  ;;  %3121 = vst [vmem:[%s3770_s12 + $0x748] sm:$0xff] %v2865_v28 }
 0x2d6   : > { %v2866_v31 = vadd.f32 %v3766_v17, %v1632_v29  ;;  %v2867_v32 = vadd.f32 %v3766_v17, %v1841_v30 }
 0x2d8   : > { %3122 = vst [vmem:[%s3770_s12 + $0x750] sm:$0xff] %v2866_v31 }
 0x2d9   : > { %3123 = vst [vmem:[%s3770_s12 + $0x758] sm:$0xff] %v2867_v32  ;;  %v1217_v33 = vpop.f32.mrf.mxu0  ;;  %v1426_v34 = vpop.f32.mrf.mxu1 }
 0x2da   : > { %v2868_v35 = vadd.f32 %v3766_v17, %v1217_v33  ;;  %v2869_v36 = vadd.f32 %v3766_v17, %v1426_v34 }
 0x2dc   : > { %3124 = vst [vmem:[%s3770_s12 + $0x760] sm:$0xff] %v2868_v35 }
 0x2dd   : > { %v1635_v37 = vpop.f32.mrf.mxu2  ;;  %v1844_v38 = vpop.f32.mrf.mxu3  ;;  %3125 = vst [vmem:[%s3770_s12 + $0x768] sm:$0xff] %v2869_v36 }
 0x2de   : > { %v2870_v39 = vadd.f32 %v3766_v17, %v1635_v37  ;;  %v2871_v40 = vadd.f32 %v3766_v17, %v1844_v38 }
 0x2e0   : > { %3126 = vst [vmem:[%s3770_s12 + $0x770] sm:$0xff] %v2870_v39 }
 0x2e1   : > { %3127 = vst [vmem:[%s3770_s12 + $0x778] sm:$0xff] %v2871_v40  ;;  %v1220_v41 = vpop.f32.mrf.mxu0  ;;  %v1429_v42 = vpop.f32.mrf.mxu1 }
 0x2e2   : > { %v2872_v43 = vadd.f32 %v3766_v17, %v1220_v41  ;;  %v2873_v44 = vadd.f32 %v3766_v17, %v1429_v42 }
 0x2e4   : > { %3128 = vst [vmem:[%s3770_s12 + $0x780] sm:$0xff] %v2872_v43 }
 0x2e5   : > { %v1638_v45 = vpop.f32.mrf.mxu2  ;;  %v1847_v46 = vpop.f32.mrf.mxu3  ;;  %3129 = vst [vmem:[%s3770_s12 + $0x788] sm:$0xff] %v2873_v44 }
 0x2e6   : > { %v2874_v47 = vadd.f32 %v3766_v17, %v1638_v45  ;;  %v2875_v48 = vadd.f32 %v3766_v17, %v1847_v46 }
 0x2e8   : > { %3130 = vst [vmem:[%s3770_s12 + $0x790] sm:$0xff] %v2874_v47 }
 0x2e9   : > { %3131 = vst [vmem:[%s3770_s12 + $0x798] sm:$0xff] %v2875_v48  ;;  %v1223_v49 = vpop.f32.mrf.mxu0  ;;  %v1432_v50 = vpop.f32.mrf.mxu1 }
 0x2ea   : > { %v2876_v51 = vadd.f32 %v3766_v17, %v1223_v49  ;;  %v2877_v52 = vadd.f32 %v3766_v17, %v1432_v50 }
 0x2ec   : > { %3132 = vst [vmem:[%s3770_s12 + $0x7a0] sm:$0xff] %v2876_v51 }
 0x2ed   : > { %v1641_v53 = vpop.f32.mrf.mxu2  ;;  %v1850_v54 = vpop.f32.mrf.mxu3  ;;  %3133 = vst [vmem:[%s3770_s12 + $0x7a8] sm:$0xff] %v2877_v52 }
 0x2ee   : > { %v2878_v55 = vadd.f32 %v3766_v17, %v1641_v53  ;;  %v2879_v56 = vadd.f32 %v3766_v17, %v1850_v54 }
 0x2f0   : > { %3134 = vst [vmem:[%s3770_s12 + $0x7b0] sm:$0xff] %v2878_v55 }
 0x2f1   : > { %3135 = vst [vmem:[%s3770_s12 + $0x7b8] sm:$0xff] %v2879_v56  ;;  %v1226_v57 = vpop.f32.mrf.mxu0  ;;  %v1435_v58 = vpop.f32.mrf.mxu1 }
 0x2f2   : > { %v2880_v59 = vadd.f32 %v3766_v17, %v1226_v57  ;;  %v2881_v60 = vadd.f32 %v3766_v17, %v1435_v58 }
 0x2f4   : > { %3136 = vst [vmem:[%s3770_s12 + $0x7c0] sm:$0xff] %v2880_v59 }
 0x2f5   : > { %v1644_v61 = vpop.f32.mrf.mxu2  ;;  %v1853_v62 = vpop.f32.mrf.mxu3  ;;  %3137 = vst [vmem:[%s3770_s12 + $0x7c8] sm:$0xff] %v2881_v60 }
 0x2f6   : > { %v2882_v63 = vadd.f32 %v3766_v17, %v1644_v61  ;;  %v2883_v0 = vadd.f32 %v3766_v17, %v1853_v62 }
 0x2f8   : > { %3138 = vst [vmem:[%s3770_s12 + $0x7d0] sm:$0xff] %v2882_v63 }
 0x2f9   : > { %3139 = vst [vmem:[%s3770_s12 + $0x7d8] sm:$0xff] %v2883_v0  ;;  %v1229_v1 = vpop.f32.mrf.mxu0  ;;  %v1438_v2 = vpop.f32.mrf.mxu1 }
 0x2fa   : > { %v2884_v3 = vadd.f32 %v3766_v17, %v1229_v1  ;;  %v2885_v4 = vadd.f32 %v3766_v17, %v1438_v2 }
 0x2fc   : > { %3140 = vst [vmem:[%s3770_s12 + $0x7e0] sm:$0xff] %v2884_v3 }
 0x2fd   : > { %v1647_v5 = vpop.f32.mrf.mxu2  ;;  %v1856_v6 = vpop.f32.mrf.mxu3  ;;  %3141 = vst [vmem:[%s3770_s12 + $0x7e8] sm:$0xff] %v2885_v4 }
 0x2fe   : > { %v2886_v7 = vadd.f32 %v3766_v17, %v1647_v5  ;;  %v2887_v8 = vadd.f32 %v3766_v17, %v1856_v6 }
 0x300   : > { %3142 = vst [vmem:[%s3770_s12 + $0x7f0] sm:$0xff] %v2886_v7 }
 0x301   : > { %3143 = vst [vmem:[%s3770_s12 + $0x7f8] sm:$0xff] %v2887_v8 }
 0x302   : > { %3369 = shalt.err (!%p3366_p7)
}
 0x303   : > { %s3422_s7 = smov 512   ;;  %s3423_s12 = smov 1024  }
 0x304   : > { %s3424_s6 = smov 32  }
 0x305   : > { %3284 = dma.vmem_to_hbm [thread:$0]  (%p3487_p5), %s3161_s20, 32768, %s3163_s17, %s3145_s22, %s3422_s7, %s3423_s12, %s3424_s6  }
 0x306 PF: > { %s3177_s8 = sand.u32 1, %s3400_s14   ;;  %p3287_p8 = pnand %p3270_p10, %p3498_p9 }
 0x307   : > { %s3178_s9 = scalar_lea.sflag [#allocation6], %s3177_s8 }
 0x308   : > { %p3288_p11 = pneg %p3287_p8 }
 0x30a   : > { %3395 = dma.done.wait (%p3288_p11), %s3178_s9, 32768  }
 0x30b   : > { %3397 = vsyncadd (%p3288_p11), %s3178_s9, 4294934528  ;;  %s17_s19 = sadd.s32 1, %s3420_s19   ;;  %s4468_s14 = smov %s3404_s15 }
 0x30c   : > { %p14_p12 = scmp.ge.s32.totalorder %s17_s19, 4   ;;  %s4469_s15 = smov %s3408_s16 }
 0x30d   : > { %s4470_s16 = smov %s3496_s25  ;;  %s4471_s17 = smov %s3416_s18 }
 0x30e   : > { %s4472_s18 = smov %s4474_s21  ;;  %16 = sbr.rel (!%p14_p12) target bundleno = 6 (0x6), region = 106 }
 0x313   :  { %3184 = vsyncpa [#allocation6], 1 }
 0x314   :  { %3186 = vsyncpa [#allocation6 + $0x1], 1 }

</bundles_post_ra>
